<compile_context>
chip_gen: v7x
topology: tpu7x:2x2x1
jax: 0.10.0
libtpu: 0.0.40
codegen_flags: <defaults>
</compile_context>

<pallas_src>
from functools import partial

import jax
import jax.numpy as jnp
from jax.experimental import pallas as pl
from jax.experimental.pallas import tpu as pltpu


def _round_up(x, m):
    return ((x + m - 1) // m) * m


def _sigmoid(z):
    # Inline sigmoid: exp + reciprocal live on the EUP/VPU, always lowers.
    return 1.0 / (1.0 + jnp.exp(-z))


def convlstm_kernel(p_ref, w_ref, b_ref, c_ref, h_out_ref, c_out_ref,
                    *, Hd, KH, KW, Wp, L_out):
    """One (batch element, row-chunk) step of the ConvLSTM cell.

    p_ref     : (Ctot, L_in)        bf16  zero-padded combined [x;h] chunk,
                                          flattened (rows, Wp) -> lane axis.
    w_ref     : (KH*KW, 4*Hd, Ctot) bf16  conv weight, one (O, I) slab per tap.
    b_ref     : (4*Hd, 1)           f32   conv bias.
    c_ref     : (Hd, L_out)         f32   c_cur on the same lanes as the output.
    h_out_ref : (Hd, L_out)               h_next.
    c_out_ref : (Hd, L_out)         f32   c_next.
    """
    p = p_ref[...]                                       # (Ctot, L_in) bf16

    # "Same" conv as KH*KW shifted dots: output lane k = y*Wp + x reads input
    # lane k + di*Wp + dj for tap (di, dj).  All taps are summed into ONE f32
    # accumulator expression (in-place MRB accumulation on v7x).
    acc = None
    t = 0
    for di in range(KH):
        for dj in range(KW):
            s = di * Wp + dj
            src = p[:, s:s + L_out]                      # (Ctot, L_out) bf16
            d = jnp.dot(w_ref[t], src, preferred_element_type=jnp.float32)
            acc = d if acc is None else acc + d
            t += 1
    acc = acc + b_ref[...]                               # (4Hd, L_out) f32

    # Gate split along sublanes (offsets 0/Hd/2Hd/3Hd, multiples of 8); same
    # order as torch.split(combined_conv, hidden_dim, dim=1): i, f, o, g.
    i = _sigmoid(acc[0 * Hd:1 * Hd, :])
    f = _sigmoid(acc[1 * Hd:2 * Hd, :])
    o = _sigmoid(acc[2 * Hd:3 * Hd, :])
    g = jnp.tanh(acc[3 * Hd:4 * Hd, :])

    c_next = f * c_ref[...] + i * g
    h_next = o * jnp.tanh(c_next)

    c_out_ref[...] = c_next.astype(c_out_ref.dtype)      # f32 cell state
    h_out_ref[...] = h_next.astype(h_out_ref.dtype)


def _pick_row_chunk(H, Wp, B, max_lanes=2048):
    """Largest divisor Rt of H with Rt*Wp <= max_lanes; >=2 chunks when B==1."""
    divisors = [d for d in range(1, H + 1) if H % d == 0]
    cands = [d for d in divisors if d * Wp <= max_lanes] or [1]
    rt = max(cands)
    if B == 1 and rt == H and H > 1:
        smaller = [d for d in cands if d < H]
        if smaller:
            rt = max(smaller)     # keep both v7x TensorCores busy
    return rt


def conv_lstm_cell(x_nchw, h_nchw, c_nchw, weight_oihw, bias):
    """ConvLSTMCell.forward(x, (h_cur, c_cur)) -> (h_next, c_next), NCHW I/O.

    weight_oihw: (4*Hd, Cin+Hd, KH, KW)  -- PyTorch Conv2d layout.
    """
    B, Cin, H, W = x_nchw.shape
    Hd = h_nchw.shape[1]
    Cout, Ctot, KH, KW = weight_oihw.shape
    assert Cout == 4 * Hd and Ctot == Cin + Hd
    ph, pw = KH // 2, KW // 2
    Wp = W + 2 * pw

    Rt = _pick_row_chunk(H, Wp, B)
    n_chunks = H // Rt
    L_out = _round_up(Rt * Wp, 128)                         # lane-dense output
    L_in = _round_up(L_out + 2 * ph * Wp + 2 * pw, 128)     # + halo head-room

    # ---- wrapper-side prep (plain XLA): concat, zero-pad, chunk, casts ----
    combined = jnp.concatenate([x_nchw, h_nchw], axis=1)            # (B,Ctot,H,W)
    padded = jnp.pad(combined, ((0, 0), (0, 0), (ph, ph), (pw, pw)))
    # Row chunks with a 2*ph halo (only the halo rows are duplicated).
    chunks = jnp.stack(
        [padded[:, :, t * Rt: t * Rt + Rt + 2 * ph, :] for t in range(n_chunks)],
        axis=1)                                      # (B, nc, Ctot, Rt+2ph, Wp)
    pflat = chunks.reshape(B, n_chunks, Ctot, (Rt + 2 * ph) * Wp)
    pflat = jnp.pad(pflat, ((0, 0), (0, 0), (0, 0),
                            (0, L_in - (Rt + 2 * ph) * Wp)))
    pflat = pflat.astype(jnp.bfloat16)

    # c_cur laid out on the exact same (row-major over (Rt, Wp)) lanes.
    c_pad = jnp.pad(c_nchw.astype(jnp.float32),
                    ((0, 0), (0, 0), (0, 0), (0, Wp - W)))          # (B,Hd,H,Wp)
    c_chk = c_pad.reshape(B, Hd, n_chunks, Rt, Wp)
    c_chk = jnp.transpose(c_chk, (0, 2, 1, 3, 4)).reshape(B, n_chunks, Hd, Rt * Wp)
    c_chk = jnp.pad(c_chk, ((0, 0), (0, 0), (0, 0), (0, L_out - Rt * Wp)))

    # One (4Hd, Ctot) weight slab per kernel tap, bf16; bias stays f32.
    w9 = jnp.transpose(weight_oihw, (2, 3, 0, 1)).reshape(KH * KW, Cout, Ctot)
    w9 = w9.astype(jnp.bfloat16)
    b2 = bias.reshape(Cout, 1).astype(jnp.float32)

    kernel = partial(convlstm_kernel, Hd=Hd, KH=KH, KW=KW, Wp=Wp, L_out=L_out)

    h_chk, c_next_chk = pl.pallas_call(
        kernel,
        out_shape=(jax.ShapeDtypeStruct((B, n_chunks, Hd, L_out), x_nchw.dtype),
                   jax.ShapeDtypeStruct((B, n_chunks, Hd, L_out), jnp.float32)),
        grid=(B, n_chunks),
        in_specs=[
            # combined chunk: one batch element, one row chunk (+halo)
            pl.BlockSpec((None, None, Ctot, L_in), lambda b, t: (b, t, 0, 0)),
            # full weight / bias, resident across the grid (constant index_map)
            pl.BlockSpec((KH * KW, Cout, Ctot), lambda b, t: (0, 0, 0)),
            pl.BlockSpec((Cout, 1), lambda b, t: (0, 0)),
            # c_cur tile
            pl.BlockSpec((None, None, Hd, L_out), lambda b, t: (b, t, 0, 0)),
        ],
        out_specs=(
            pl.BlockSpec((None, None, Hd, L_out), lambda b, t: (b, t, 0, 0)),
            pl.BlockSpec((None, None, Hd, L_out), lambda b, t: (b, t, 0, 0)),
        ),
        compiler_params=pltpu.CompilerParams(
            dimension_semantics=("parallel", "parallel"),
            vmem_limit_bytes=32 * 1024 * 1024,
        ),
    )(pflat, w9, b2, c_chk)

    def unchunk(out):
        out = out[..., :Rt * Wp].reshape(B, n_chunks, Hd, Rt, Wp)[..., :W]
        return jnp.transpose(out, (0, 2, 1, 3, 4)).reshape(B, Hd, H, W)

    # h_next in input dtype, c_next kept f32 (review: avoid recurrent drift).
    return unchunk(h_chk), unchunk(c_next_chk)


def conv_lstm_cell_ref(x, h, c, weight_oihw, bias):
    """Pure-JAX f32 reference (lax conv) for correctness check."""
    Hd = h.shape[1]
    combined = jnp.concatenate([x, h], axis=1)
    cc = jax.lax.conv_general_dilated(
        combined, weight_oihw, window_strides=(1, 1), padding="SAME",
        dimension_numbers=("NCHW", "OIHW", "NCHW"),
        precision=jax.lax.Precision.HIGHEST) + bias.reshape(1, -1, 1, 1)
    i = jax.nn.sigmoid(cc[:, 0 * Hd:1 * Hd])
    f = jax.nn.sigmoid(cc[:, 1 * Hd:2 * Hd])
    o = jax.nn.sigmoid(cc[:, 2 * Hd:3 * Hd])
    g = jnp.tanh(cc[:, 3 * Hd:4 * Hd])
    c_next = f * c + i * g
    h_next = o * jnp.tanh(c_next)
    return h_next, c_next


if __name__ == "__main__":
    # Module config (small): input_dim=4, hidden_dim=32, kernel=(3,3), bias=True
    B, Cin, Hd, H, W = 2, 4, 32, 16, 16
    KH, KW = 3, 3

    key = jax.random.PRNGKey(0)
    kx, kh, kc, kw_, kb = jax.random.split(key, 5)

    x = jax.random.normal(kx, (B, Cin, H, W), jnp.float32)       # NCHW input
    h_cur = jax.random.normal(kh, (B, Hd, H, W), jnp.float32)    # NCHW hidden
    c_cur = jax.random.normal(kc, (B, Hd, H, W), jnp.float32)    # NCHW cell

    # PyTorch Conv2d weight layout: OIHW = (4*Hd, Cin+Hd, KH, KW)
    weight_oihw = 0.05 * jax.random.normal(kw_, (4 * Hd, Cin + Hd, KH, KW),
                                           jnp.float32)
    bias = 0.01 * jax.random.normal(kb, (4 * Hd,), jnp.float32)

    cell = jax.jit(conv_lstm_cell)
    h_next, c_next = cell(x, h_cur, c_cur, weight_oihw, bias)
    jax.block_until_ready((h_next, c_next))

    h_ref, c_ref = conv_lstm_cell_ref(x, h_cur, c_cur, weight_oihw, bias)
    assert h_next.shape == (B, Hd, H, W) and c_next.shape == (B, Hd, H, W)
    # bf16 matmul operands with f32 accumulation -> slightly looser tolerance.
    assert jnp.allclose(h_next, h_ref, atol=3e-2, rtol=3e-2)
    assert jnp.allclose(c_next, c_ref, atol=3e-2, rtol=3e-2)

    print("KERNEL_OK")
</pallas_src>

<mosaic_0001>
module attributes {stable_mosaic.version = 11 : i64} {
  func.func @convlstm_kernel(%arg0: i32, %arg1: i32, %arg2: memref<1x1x36x512xbf16, #tpu.memory_space<vmem>>, %arg3: memref<9x128x36xbf16, #tpu.memory_space<vmem>>, %arg4: memref<128x1xf32, #tpu.memory_space<vmem>>, %arg5: memref<1x1x32x384xf32, #tpu.memory_space<vmem>>, %arg6: memref<1x1x32x384xf32, #tpu.memory_space<vmem>>, %arg7: memref<1x1x32x384xf32, #tpu.memory_space<vmem>>) attributes {dimension_semantics = [#tpu.dimension_semantics<parallel>, #tpu.dimension_semantics<parallel>], iteration_bounds = array<i64: 2, 1>, scalar_prefetch = 0 : i64, scratch_operands = 0 : i64, tpu.core_type = #tpu.core_type<tc>, window_params = [{transform_indices = @transform_0, window_bounds = array<i64: 1, 1, 36, 512>}, {pipeline_mode = #tpu.pipeline_mode<synchronous>, transform_indices = @transform_1, window_bounds = array<i64: 9, 128, 36>}, {pipeline_mode = #tpu.pipeline_mode<synchronous>, transform_indices = @transform_2, window_bounds = array<i64: 128, 1>}, {transform_indices = @transform_3, window_bounds = array<i64: 1, 1, 32, 384>}, {transform_indices = @transform_4, window_bounds = array<i64: 1, 1, 32, 384>}, {transform_indices = @transform_5, window_bounds = array<i64: 1, 1, 32, 384>}]} {
    %c0 = arith.constant 0 : index
    %c0_0 = arith.constant 0 : index
    %c0_1 = arith.constant 0 : index
    %c0_2 = arith.constant 0 : index
    %0 = vector.load %arg2[%c0, %c0_0, %c0_1, %c0_2] : memref<1x1x36x512xbf16, #tpu.memory_space<vmem>>, vector<1x1x36x512xbf16>
    %1 = vector.shape_cast %0 : vector<1x1x36x512xbf16> to vector<36x512xbf16>
    %2 = vector.extract_strided_slice %1 {offsets = [0, 0], sizes = [36, 384], strides = [1, 1]} : vector<36x512xbf16> to vector<36x384xbf16>
    %c0_3 = arith.constant 0 : index
    %c0_4 = arith.constant 0 : index
    %c0_5 = arith.constant 0 : index
    %3 = vector.load %arg3[%c0_3, %c0_4, %c0_5] : memref<9x128x36xbf16, #tpu.memory_space<vmem>>, vector<1x128x36xbf16>
    %4 = vector.shape_cast %3 : vector<1x128x36xbf16> to vector<128x36xbf16>
    %cst = arith.constant dense<0.000000e+00> : vector<128x384xf32>
    %5 = tpu.matmul %4, %2, %cst {dimension_numbers = #tpu.dot_dimension_numbers<[1], [0], [0], [1], [0, 0, 1, 1], [], []>} : vector<128x36xbf16>, vector<36x384xbf16>, vector<128x384xf32> -> vector<128x384xf32>
    %6 = vector.extract_strided_slice %1 {offsets = [0, 1], sizes = [36, 384], strides = [1, 1]} : vector<36x512xbf16> to vector<36x384xbf16>
    %c1 = arith.constant 1 : index
    %c0_6 = arith.constant 0 : index
    %c0_7 = arith.constant 0 : index
    %7 = vector.load %arg3[%c1, %c0_6, %c0_7] : memref<9x128x36xbf16, #tpu.memory_space<vmem>>, vector<1x128x36xbf16>
    %8 = vector.shape_cast %7 : vector<1x128x36xbf16> to vector<128x36xbf16>
    %cst_8 = arith.constant dense<0.000000e+00> : vector<128x384xf32>
    %9 = tpu.matmul %8, %6, %cst_8 {dimension_numbers = #tpu.dot_dimension_numbers<[1], [0], [0], [1], [0, 0, 1, 1], [], []>} : vector<128x36xbf16>, vector<36x384xbf16>, vector<128x384xf32> -> vector<128x384xf32>
    %10 = arith.addf %5, %9 : vector<128x384xf32>
    %11 = vector.extract_strided_slice %1 {offsets = [0, 2], sizes = [36, 384], strides = [1, 1]} : vector<36x512xbf16> to vector<36x384xbf16>
    %c2 = arith.constant 2 : index
    %c0_9 = arith.constant 0 : index
    %c0_10 = arith.constant 0 : index
    %12 = vector.load %arg3[%c2, %c0_9, %c0_10] : memref<9x128x36xbf16, #tpu.memory_space<vmem>>, vector<1x128x36xbf16>
    %13 = vector.shape_cast %12 : vector<1x128x36xbf16> to vector<128x36xbf16>
    %cst_11 = arith.constant dense<0.000000e+00> : vector<128x384xf32>
    %14 = tpu.matmul %13, %11, %cst_11 {dimension_numbers = #tpu.dot_dimension_numbers<[1], [0], [0], [1], [0, 0, 1, 1], [], []>} : vector<128x36xbf16>, vector<36x384xbf16>, vector<128x384xf32> -> vector<128x384xf32>
    %15 = arith.addf %10, %14 : vector<128x384xf32>
    %16 = vector.extract_strided_slice %1 {offsets = [0, 18], sizes = [36, 384], strides = [1, 1]} : vector<36x512xbf16> to vector<36x384xbf16>
    %c3 = arith.constant 3 : index
    %c0_12 = arith.constant 0 : index
    %c0_13 = arith.constant 0 : index
    %17 = vector.load %arg3[%c3, %c0_12, %c0_13] : memref<9x128x36xbf16, #tpu.memory_space<vmem>>, vector<1x128x36xbf16>
    %18 = vector.shape_cast %17 : vector<1x128x36xbf16> to vector<128x36xbf16>
    %cst_14 = arith.constant dense<0.000000e+00> : vector<128x384xf32>
    %19 = tpu.matmul %18, %16, %cst_14 {dimension_numbers = #tpu.dot_dimension_numbers<[1], [0], [0], [1], [0, 0, 1, 1], [], []>} : vector<128x36xbf16>, vector<36x384xbf16>, vector<128x384xf32> -> vector<128x384xf32>
    %20 = arith.addf %15, %19 : vector<128x384xf32>
    %21 = vector.extract_strided_slice %1 {offsets = [0, 19], sizes = [36, 384], strides = [1, 1]} : vector<36x512xbf16> to vector<36x384xbf16>
    %c4 = arith.constant 4 : index
    %c0_15 = arith.constant 0 : index
    %c0_16 = arith.constant 0 : index
    %22 = vector.load %arg3[%c4, %c0_15, %c0_16] : memref<9x128x36xbf16, #tpu.memory_space<vmem>>, vector<1x128x36xbf16>
    %23 = vector.shape_cast %22 : vector<1x128x36xbf16> to vector<128x36xbf16>
    %cst_17 = arith.constant dense<0.000000e+00> : vector<128x384xf32>
    %24 = tpu.matmul %23, %21, %cst_17 {dimension_numbers = #tpu.dot_dimension_numbers<[1], [0], [0], [1], [0, 0, 1, 1], [], []>} : vector<128x36xbf16>, vector<36x384xbf16>, vector<128x384xf32> -> vector<128x384xf32>
    %25 = arith.addf %20, %24 : vector<128x384xf32>
    %26 = vector.extract_strided_slice %1 {offsets = [0, 20], sizes = [36, 384], strides = [1, 1]} : vector<36x512xbf16> to vector<36x384xbf16>
    %c5 = arith.constant 5 : index
    %c0_18 = arith.constant 0 : index
    %c0_19 = arith.constant 0 : index
    %27 = vector.load %arg3[%c5, %c0_18, %c0_19] : memref<9x128x36xbf16, #tpu.memory_space<vmem>>, vector<1x128x36xbf16>
    %28 = vector.shape_cast %27 : vector<1x128x36xbf16> to vector<128x36xbf16>
    %cst_20 = arith.constant dense<0.000000e+00> : vector<128x384xf32>
    %29 = tpu.matmul %28, %26, %cst_20 {dimension_numbers = #tpu.dot_dimension_numbers<[1], [0], [0], [1], [0, 0, 1, 1], [], []>} : vector<128x36xbf16>, vector<36x384xbf16>, vector<128x384xf32> -> vector<128x384xf32>
    %30 = arith.addf %25, %29 : vector<128x384xf32>
    %31 = vector.extract_strided_slice %1 {offsets = [0, 36], sizes = [36, 384], strides = [1, 1]} : vector<36x512xbf16> to vector<36x384xbf16>
    %c6 = arith.constant 6 : index
    %c0_21 = arith.constant 0 : index
    %c0_22 = arith.constant 0 : index
    %32 = vector.load %arg3[%c6, %c0_21, %c0_22] : memref<9x128x36xbf16, #tpu.memory_space<vmem>>, vector<1x128x36xbf16>
    %33 = vector.shape_cast %32 : vector<1x128x36xbf16> to vector<128x36xbf16>
    %cst_23 = arith.constant dense<0.000000e+00> : vector<128x384xf32>
    %34 = tpu.matmul %33, %31, %cst_23 {dimension_numbers = #tpu.dot_dimension_numbers<[1], [0], [0], [1], [0, 0, 1, 1], [], []>} : vector<128x36xbf16>, vector<36x384xbf16>, vector<128x384xf32> -> vector<128x384xf32>
    %35 = arith.addf %30, %34 : vector<128x384xf32>
    %36 = vector.extract_strided_slice %1 {offsets = [0, 37], sizes = [36, 384], strides = [1, 1]} : vector<36x512xbf16> to vector<36x384xbf16>
    %c7 = arith.constant 7 : index
    %c0_24 = arith.constant 0 : index
    %c0_25 = arith.constant 0 : index
    %37 = vector.load %arg3[%c7, %c0_24, %c0_25] : memref<9x128x36xbf16, #tpu.memory_space<vmem>>, vector<1x128x36xbf16>
    %38 = vector.shape_cast %37 : vector<1x128x36xbf16> to vector<128x36xbf16>
    %cst_26 = arith.constant dense<0.000000e+00> : vector<128x384xf32>
    %39 = tpu.matmul %38, %36, %cst_26 {dimension_numbers = #tpu.dot_dimension_numbers<[1], [0], [0], [1], [0, 0, 1, 1], [], []>} : vector<128x36xbf16>, vector<36x384xbf16>, vector<128x384xf32> -> vector<128x384xf32>
    %40 = arith.addf %35, %39 : vector<128x384xf32>
    %41 = vector.extract_strided_slice %1 {offsets = [0, 38], sizes = [36, 384], strides = [1, 1]} : vector<36x512xbf16> to vector<36x384xbf16>
    %c8 = arith.constant 8 : index
    %c0_27 = arith.constant 0 : index
    %c0_28 = arith.constant 0 : index
    %42 = vector.load %arg3[%c8, %c0_27, %c0_28] : memref<9x128x36xbf16, #tpu.memory_space<vmem>>, vector<1x128x36xbf16>
    %43 = vector.shape_cast %42 : vector<1x128x36xbf16> to vector<128x36xbf16>
    %cst_29 = arith.constant dense<0.000000e+00> : vector<128x384xf32>
    %44 = tpu.matmul %43, %41, %cst_29 {dimension_numbers = #tpu.dot_dimension_numbers<[1], [0], [0], [1], [0, 0, 1, 1], [], []>} : vector<128x36xbf16>, vector<36x384xbf16>, vector<128x384xf32> -> vector<128x384xf32>
    %45 = arith.addf %40, %44 : vector<128x384xf32>
    %c0_30 = arith.constant 0 : index
    %c0_31 = arith.constant 0 : index
    %46 = vector.load %arg4[%c0_30, %c0_31] : memref<128x1xf32, #tpu.memory_space<vmem>>, vector<128x1xf32>
    %47 = vector.broadcast %46 : vector<128x1xf32> to vector<128x384xf32>
    %48 = arith.addf %45, %47 : vector<128x384xf32>
    %49 = vector.extract_strided_slice %48 {offsets = [0, 0], sizes = [32, 384], strides = [1, 1]} : vector<128x384xf32> to vector<32x384xf32>
    %cst_32 = arith.constant 0.000000e+00 : f32
    %50 = vector.broadcast %cst_32 : f32 to vector<32x384xf32>
    %51 = arith.subf %50, %49 : vector<32x384xf32>
    %52 = math.exp %51 : vector<32x384xf32>
    %cst_33 = arith.constant 1.000000e+00 : f32
    %53 = vector.broadcast %cst_33 : f32 to vector<32x384xf32>
    %54 = arith.addf %53, %52 : vector<32x384xf32>
    %cst_34 = arith.constant 1.000000e+00 : f32
    %55 = vector.broadcast %cst_34 : f32 to vector<32x384xf32>
    %56 = arith.divf %55, %54 : vector<32x384xf32>
    %57 = vector.extract_strided_slice %48 {offsets = [32, 0], sizes = [32, 384], strides = [1, 1]} : vector<128x384xf32> to vector<32x384xf32>
    %cst_35 = arith.constant 0.000000e+00 : f32
    %58 = vector.broadcast %cst_35 : f32 to vector<32x384xf32>
    %59 = arith.subf %58, %57 : vector<32x384xf32>
    %60 = math.exp %59 : vector<32x384xf32>
    %cst_36 = arith.constant 1.000000e+00 : f32
    %61 = vector.broadcast %cst_36 : f32 to vector<32x384xf32>
    %62 = arith.addf %61, %60 : vector<32x384xf32>
    %cst_37 = arith.constant 1.000000e+00 : f32
    %63 = vector.broadcast %cst_37 : f32 to vector<32x384xf32>
    %64 = arith.divf %63, %62 : vector<32x384xf32>
    %65 = vector.extract_strided_slice %48 {offsets = [64, 0], sizes = [32, 384], strides = [1, 1]} : vector<128x384xf32> to vector<32x384xf32>
    %cst_38 = arith.constant 0.000000e+00 : f32
    %66 = vector.broadcast %cst_38 : f32 to vector<32x384xf32>
    %67 = arith.subf %66, %65 : vector<32x384xf32>
    %68 = math.exp %67 : vector<32x384xf32>
    %cst_39 = arith.constant 1.000000e+00 : f32
    %69 = vector.broadcast %cst_39 : f32 to vector<32x384xf32>
    %70 = arith.addf %69, %68 : vector<32x384xf32>
    %cst_40 = arith.constant 1.000000e+00 : f32
    %71 = vector.broadcast %cst_40 : f32 to vector<32x384xf32>
    %72 = arith.divf %71, %70 : vector<32x384xf32>
    %73 = vector.extract_strided_slice %48 {offsets = [96, 0], sizes = [32, 384], strides = [1, 1]} : vector<128x384xf32> to vector<32x384xf32>
    %74 = math.tanh %73 : vector<32x384xf32>
    %c0_41 = arith.constant 0 : index
    %c0_42 = arith.constant 0 : index
    %c0_43 = arith.constant 0 : index
    %c0_44 = arith.constant 0 : index
    %75 = vector.load %arg5[%c0_41, %c0_42, %c0_43, %c0_44] : memref<1x1x32x384xf32, #tpu.memory_space<vmem>>, vector<1x1x32x384xf32>
    %76 = vector.shape_cast %75 : vector<1x1x32x384xf32> to vector<32x384xf32>
    %77 = arith.mulf %64, %76 : vector<32x384xf32>
    %78 = arith.mulf %56, %74 : vector<32x384xf32>
    %79 = arith.addf %77, %78 : vector<32x384xf32>
    %80 = math.tanh %79 : vector<32x384xf32>
    %81 = arith.mulf %72, %80 : vector<32x384xf32>
    %c0_45 = arith.constant 0 : index
    %c0_46 = arith.constant 0 : index
    %c0_47 = arith.constant 0 : index
    %c0_48 = arith.constant 0 : index
    %82 = vector.load %arg7[%c0_45, %c0_46, %c0_47, %c0_48] : memref<1x1x32x384xf32, #tpu.memory_space<vmem>>, vector<1x1x32x384xf32>
    %83 = vector.shape_cast %82 : vector<1x1x32x384xf32> to vector<32x384xf32>
    %84 = vector.shape_cast %79 : vector<32x384xf32> to vector<1x1x32x384xf32>
    tpu.vector_store %arg7[%c0_45, %c0_46, %c0_47, %c0_48], %84 {strides = array<i32>} : memref<1x1x32x384xf32, #tpu.memory_space<vmem>>, vector<1x1x32x384xf32>,
    %c0_49 = arith.constant 0 : index
    %c0_50 = arith.constant 0 : index
    %c0_51 = arith.constant 0 : index
    %c0_52 = arith.constant 0 : index
    %85 = vector.load %arg6[%c0_49, %c0_50, %c0_51, %c0_52] : memref<1x1x32x384xf32, #tpu.memory_space<vmem>>, vector<1x1x32x384xf32>
    %86 = vector.shape_cast %85 : vector<1x1x32x384xf32> to vector<32x384xf32>
    %87 = vector.shape_cast %81 : vector<32x384xf32> to vector<1x1x32x384xf32>
    tpu.vector_store %arg6[%c0_49, %c0_50, %c0_51, %c0_52], %87 {strides = array<i32>} : memref<1x1x32x384xf32, #tpu.memory_space<vmem>>, vector<1x1x32x384xf32>,
    return
  }
  func.func @transform_0(%arg0: i32, %arg1: i32) -> (i32, i32, i32, i32) {
    %c0_i32 = arith.constant 0 : i32
    %c0_i32_0 = arith.constant 0 : i32
    %c0_i32_1 = arith.constant 0 : i32
    return %arg0, %arg1, %c0_i32, %c0_i32_0 : i32, i32, i32, i32
  }
  func.func @transform_1(%arg0: i32, %arg1: i32) -> (i32, i32, i32) {
    %c0_i32 = arith.constant 0 : i32
    %c0_i32_0 = arith.constant 0 : i32
    %c0_i32_1 = arith.constant 0 : i32
    %c0_i32_2 = arith.constant 0 : i32
    return %c0_i32, %c0_i32_0, %c0_i32_1 : i32, i32, i32
  }
  func.func @transform_2(%arg0: i32, %arg1: i32) -> (i32, i32) {
    %c0_i32 = arith.constant 0 : i32
    %c0_i32_0 = arith.constant 0 : i32
    %c0_i32_1 = arith.constant 0 : i32
    return %c0_i32, %c0_i32_0 : i32, i32
  }
  func.func @transform_3(%arg0: i32, %arg1: i32) -> (i32, i32, i32, i32) {
    %c0_i32 = arith.constant 0 : i32
    %c0_i32_0 = arith.constant 0 : i32
    %c0_i32_1 = arith.constant 0 : i32
    return %arg0, %arg1, %c0_i32, %c0_i32_0 : i32, i32, i32, i32
  }
  func.func @transform_4(%arg0: i32, %arg1: i32) -> (i32, i32, i32, i32) {
    %c0_i32 = arith.constant 0 : i32
    %c0_i32_0 = arith.constant 0 : i32
    %c0_i32_1 = arith.constant 0 : i32
    return %arg0, %arg1, %c0_i32, %c0_i32_0 : i32, i32, i32, i32
  }
  func.func @transform_5(%arg0: i32, %arg1: i32) -> (i32, i32, i32, i32) {
    %c0_i32 = arith.constant 0 : i32
    %c0_i32_0 = arith.constant 0 : i32
    %c0_i32_1 = arith.constant 0 : i32
    return %arg0, %arg1, %c0_i32, %c0_i32_0 : i32, i32, i32, i32
  }
}

</mosaic_0001>

<bundles_post_ra>
// kernel: conv_lstm_cell.1
= control target key start
LH: loop header
LB: loop body
LE: loop exit
PB: predicated region body
PF: predicated region fallthrough
CT: control target
= control target key end

     0   :  { %s5820_s18 = smov 0   ;;  %s5822_s19 = smov 0   ;;  %s7499_s0 = inlined_call_operand.vmem [shape: bf16[2,1,36,512], index: 0, kind: input, shape index: {}]   ;;  %s7500_s1 = inlined_call_operand.vmem [shape: bf16[9,128,36], index: 1, kind: input, shape index: {}]   ;;  %s7501_s2 = inlined_call_operand.vmem [shape: f32[128,1], index: 2, kind: input, shape index: {}]   ;;  %s7502_s3 = inlined_call_operand.vmem [shape: f32[2,1,32,384], index: 3, kind: input, shape index: {}]   ;;  %s7503_s4 = inlined_call_operand.vmem [shape: f32[2,1,32,384], index: 4, kind: output, shape index: {0}]   ;;  %s7504_s5 = inlined_call_operand.vmem [shape: f32[2,1,32,384], index: 5, kind: output, shape index: {1}]  }
   0x1   :  { %s5824_s20 = smov 0  }
   0x2 LB: > { %s28_s21 = sadd.s32 1, %s5775_s19  ;;  %p4372_p0 = scmp.ge.s32.totalorder %s5779_s20, 1  ;;  %s5779_s20 = sphi %s5824_s20, %s16_s20   ;;  %s5775_s19 = sphi %s5822_s19, %s7549_s19   ;;  %s5771_s18 = sphi %s5820_s18, %s7548_s18  }
   0x3   : > { %p30_p1 = scmp.ge.s32.totalorder %s28_s21, 2  ;;  %p228_p2 = scmp.lt.s32.totalorder %s5779_s20, 3 }
   0x5   : > { %s7551_s21 = smov (%p30_p1, %s28_s21), 0  ;;  %p229_p3 = pnand %p4372_p0, %p228_p2 }
   0x7   : > { %232 = sbr.rel (%p229_p3) target bundleno = 879 (0x36f), region = 36 }
   0xe   : > { %p282_p4 = scmp.lt.s32.totalorder %s5771_s18, 1  ;;  %s5781_s26 = smov 127   ;;  %v7509_v10 = vmov 0   ;;  %vm468_vm0 = vcmask 1039360   ;;  %vm1099_vm1 = vcmask 1031168   ;;  %vm509_vm2 = vcmask 1041408  }
   0xf   : > { %s5782_s27 = smov 126   ;;  %1180 = vmatprep.mubr.bf16.mxu0 %v7509_v10  ;;  %551 = vmatprep.mubr.bf16.mxu1 %v7509_v10  ;;  %s5784_s28 = smov 110   ;;  %v6075_v42 = vld [vmem:[%s7500_s1 + $0x80] sm:$0xff]   ;;  %vm484_vm3 = vcmask 293888   ;;  %vm1487_vm4 = vcmask 900096   ;;  %v6110_v52 = vld [vmem:[%s7500_s1 + $0x88] sm:$0xff]  }
  0x10   : > { %s7553_s18 = smov (!%p282_p4, %s5771_s18), 1  ;;  %5475 = vset.pattern.permute.xlu0 %v7509_v10  ;;  %5476 = vset.pattern.permute.xlu1 %v7509_v10  ;;  %s5785_s29 = smov 109   ;;  %v6094_v48 = vld [vmem:[%s7500_s1 + $0x40] sm:$0xff]   ;;  %v6123_v56 = vld [vmem:[%s7500_s1 + $0x48] sm:$0xff]   ;;  %v6140_v61 = vld [vmem:[%s7500_s1 + $0x90] sm:$0xff]   ;;  %vm1875_vm5 = vcmask 891904  }
  0x11   : > { %s5440_s22 = smul.u32 80, %s7553_s18  ;;  %s5786_s30 = smov 108   ;;  %vm2263_vm6 = vcmask 883712   ;;  %vm2651_vm7 = vcmask 752640   ;;  %vm3039_vm8 = vcmask 744448   ;;  %vm3427_vm9 = vcmask 736256  }
  0x12   : > { %s5787_s6 = smov 92   ;;  %s5788_s7 = smov 91  }
  0x13   : > { %s5844_s25 = scalar_lea.vmem %s7499_s0, %s5440_s22  ;;  %s5789_s22 = smov 90  }
  0x14   : > { %v5847_v0 = vld [vmem:[%s5844_s25 + $0x4] ss:$16 sps:$4 sm:$0xff]   ;;  %v5854_v1 = vld [vmem:[%s5844_s25 + $0x8] ss:$16 sps:$4 sm:$0xff]   ;;  %v5861_v2 = vld [vmem:[%s5844_s25] ss:$16 sps:$4 sm:$0xff]  }
  0x15   : > { %446 = vrot.lane.b32.xlu1 %v5847_v0, %s5781_s26  ;;  %1077 = vrot.lane.b32.xlu0 %v5847_v0, %s5782_s27  ;;  %v5864_v3 = vld [vmem:[%s5844_s25 + $0x28] ss:$16 sps:$4 sm:$0xff]   ;;  %v5867_v4 = vld [vmem:[%s5844_s25 + $0x24] ss:$16 sps:$4 sm:$0xff]   ;;  %s7355_s17 = smul.u32 96, %s7553_s18 }
  0x16   : > { %v5878_v5 = vld [vmem:[%s5844_s25 + $0x20] ss:$16 sps:$4 sm:$0xff]   ;;  %v328_v7 = vld [vmem:[%s5844_s25 + $0x48] sm:$0x33] }
  0x17   : > { %v327_v6 = vld [vmem:[%s5844_s25 + $0x40] sm:$0x33]  ;;  %v5902_v11 = vcombine.low %v328_v7, %v328_v7  ;;  %v5925_v12 = vld [vmem:[%s5844_s25 + $0xc] ss:$16 sps:$4 sm:$0xff]   ;;  %v5938_v14 = vcombine.high %v328_v7, %v328_v7  ;;  %v6153_v7 = vld [vmem:[%s7500_s1 + $0x50] sm:$0xff]   ;;  %s7372_s23 = scalar_lea.vmem %s7502_s3, %s7355_s17 }
  0x18   : > { %v5890_v8 = vcombine.high %v327_v6, %v327_v6  ;;  %v5892_v9 = vcombine.low %v327_v6, %v327_v6  ;;  %v5932_v13 = vld [vmem:[%s5844_s25 + $0x2c] ss:$16 sps:$4 sm:$0xff]  }
  0x19   : > { %448 = vrot.lane.b32.xlu1 %v5854_v1, %s5781_s26  ;;  %1079 = vrot.lane.b32.xlu0 %v5854_v1, %s5782_s27 }
  0x1d   : > { %444 = vrot.lane.b32.xlu1 %v5861_v2, %s5781_s26  ;;  %1075 = vrot.lane.b32.xlu0 %v5861_v2, %s5782_s27 }
  0x21   : > { %1087 = vrot.lane.b32.xlu1 %v5864_v3, %s5782_s27  ;;  %1085 = vrot.lane.b32.xlu0 %v5867_v4, %s5782_s27 }
  0x25   : > { %456 = vrot.lane.b32.xlu1 %v5864_v3, %s5781_s26  ;;  %454 = vrot.lane.b32.xlu0 %v5867_v4, %s5781_s26 }
  0x29   : > { %452 = vrot.lane.b32.xlu1 %v5878_v5, %s5781_s26  ;;  %1083 = vrot.lane.b32.xlu0 %v5878_v5, %s5782_s27 }
  0x2d   : > { %1093 = vrot.lane.b32.xlu1 %v5890_v8, %s5782_s27  ;;  %1091 = vrot.lane.b32.xlu0 %v5892_v9, %s5782_s27 }
  0x31   : > { %460 = vrot.lane.b32.xlu1 %v5892_v9, %s5781_s26  ;;  %1095 = vrot.lane.b32.xlu0 %v5902_v11, %s5782_s27 }
  0x35   : > { %464 = vrot.lane.b32.xlu1 %v5902_v11, %s5781_s26  ;;  %462 = vrot.lane.b32.xlu0 %v5890_v8, %s5781_s26 }
  0x39   : > { %1467 = vrot.lane.b32.xlu1 %v5854_v1, %s5784_s28  ;;  %1465 = vrot.lane.b32.xlu0 %v5847_v0, %s5784_s28 }
  0x3d   : > { %1473 = vrot.lane.b32.xlu1 %v5867_v4, %s5784_s28  ;;  %1463 = vrot.lane.b32.xlu0 %v5861_v2, %s5784_s28 }
  0x41   : > { %1471 = vrot.lane.b32.xlu1 %v5878_v5, %s5784_s28  ;;  %1475 = vrot.lane.b32.xlu0 %v5864_v3, %s5784_s28 }
  0x45   : > { %1481 = vrot.lane.b32.xlu1 %v5890_v8, %s5784_s28  ;;  %1479 = vrot.lane.b32.xlu0 %v5892_v9, %s5784_s28 }
  0x49   : > { %450 = vrot.lane.b32.xlu1 %v5925_v12, %s5781_s26  ;;  %1483 = vrot.lane.b32.xlu0 %v5902_v11, %s5784_s28 }
  0x4d   : > { %466 = vrot.lane.b32.xlu1 %v5938_v14, %s5781_s26  ;;  %458 = vrot.lane.b32.xlu0 %v5932_v13, %s5781_s26  ;;  %s7391_s26 = scalar_lea.vmem %s7504_s5, %s7355_s17 }
  0x51   : > { %1855 = vrot.lane.b32.xlu1 %v5854_v1, %s5785_s29  ;;  %1853 = vrot.lane.b32.xlu0 %v5847_v0, %s5785_s29 }
  0x55   : > { %1861 = vrot.lane.b32.xlu1 %v5867_v4, %s5785_s29  ;;  %1851 = vrot.lane.b32.xlu0 %v5861_v2, %s5785_s29 }
  0x59   : > { %1859 = vrot.lane.b32.xlu1 %v5878_v5, %s5785_s29  ;;  %1863 = vrot.lane.b32.xlu0 %v5864_v3, %s5785_s29 }
  0x5d   : > { %1869 = vrot.lane.b32.xlu1 %v5890_v8, %s5785_s29  ;;  %1867 = vrot.lane.b32.xlu0 %v5892_v9, %s5785_s29 }
  0x61   : > { %2241 = vrot.lane.b32.xlu1 %v5847_v0, %s5786_s30  ;;  %1871 = vrot.lane.b32.xlu0 %v5902_v11, %s5785_s29 }
  0x65   : > { %2239 = vrot.lane.b32.xlu1 %v5861_v2, %s5786_s30  ;;  %2243 = vrot.lane.b32.xlu0 %v5854_v1, %s5786_s30 }
  0x69   : > { %2251 = vrot.lane.b32.xlu1 %v5864_v3, %s5786_s30  ;;  %2249 = vrot.lane.b32.xlu0 %v5867_v4, %s5786_s30 }
  0x6d   : > { %2255 = vrot.lane.b32.xlu1 %v5892_v9, %s5786_s30  ;;  %2247 = vrot.lane.b32.xlu0 %v5878_v5, %s5786_s30 }
  0x71   : > { %2259 = vrot.lane.b32.xlu1 %v5902_v11, %s5786_s30  ;;  %2257 = vrot.lane.b32.xlu0 %v5890_v8, %s5786_s30 }
  0x75   : > { %1089 = vrot.lane.b32.xlu1 %v5932_v13, %s5782_s27  ;;  %1081 = vrot.lane.b32.xlu0 %v5925_v12, %s5782_s27 }
  0x79   : > { %2629 = vrot.lane.b32.xlu1 %v5847_v0, %s5787_s6  ;;  %1097 = vrot.lane.b32.xlu0 %v5938_v14, %s5782_s27 }
  0x7d   : > { %1469 = vrot.lane.b32.xlu1 %v5925_v12, %s5784_s28  ;;  %2631 = vrot.lane.b32.xlu0 %v5854_v1, %s5787_s6 }
  0x81   : > { %2637 = vrot.lane.b32.xlu1 %v5867_v4, %s5787_s6  ;;  %2627 = vrot.lane.b32.xlu0 %v5861_v2, %s5787_s6 }
  0x85   : > { %1477 = vrot.lane.b32.xlu1 %v5932_v13, %s5784_s28  ;;  %2639 = vrot.lane.b32.xlu0 %v5864_v3, %s5787_s6 }
  0x87   : > { %v447_v15 = vpop.permute.xlu1 %446  ;;  %v1078_v16 = vpop.permute.xlu0 %1077 }
  0x89   : > { %2643 = vrot.lane.b32.xlu1 %v5892_v9, %s5787_s6  ;;  %2635 = vrot.lane.b32.xlu0 %v5878_v5, %s5787_s6 }
  0x8b   : > { %v6004_v17 = vpop.permute.xlu1 %448  ;;  %v6006_v18 = vpop.permute.xlu0 %1079 }
  0x8c   : > { %v470_v19 = vsel %vm468_vm0, %v447_v15, %v6004_v17  ;;  %v6012_v20 = vsel %vm1099_vm1, %v1078_v16, %v6006_v18 }
  0x8d   : > { %519 = vmatprep.subr.bf16.mxu1 %v470_v19  ;;  %2647 = vrot.lane.b32.xlu1 %v5902_v11, %s5787_s6 }
  0x8e   : > { %2645 = vrot.lane.b32.xlu0 %v5890_v8, %s5787_s6  ;;  %1148 = vmatprep.subr.bf16.mxu0 %v6012_v20 }
  0x8f   : > { %v445_v21 = vpop.permute.xlu1 %444  ;;  %v1076_v22 = vpop.permute.xlu0 %1075 }
  0x90   : > { %v469_v23 = vsel %vm468_vm0, %v445_v21, %v447_v15  ;;  %v6021_v24 = vsel %vm1099_vm1, %v1076_v22, %v1078_v16 }
  0x91   : > { %1857 = vrot.lane.b32.xlu1 %v5925_v12, %s5785_s29  ;;  %520 = vmatpush1.bf16.msra.mxu1 %v469_v23  ;;  %v6172_v23 = vld [vmem:[%s7500_s1 + $0x98] sm:$0xff]  }
  0x92   : > { %1485 = vrot.lane.b32.xlu0 %v5938_v14, %s5784_s28  ;;  %1149 = vmatpush1.bf16.msra.mxu0 %v6021_v24 }
  0x93   : > { %v6028_v25 = vpop.permute.xlu1 %1087  ;;  %v1086_v26 = vpop.permute.xlu0 %1085 }
  0x94   : > { %v6032_v27 = vsel %vm1099_vm1, %v1086_v26, %v6028_v25 }
  0x95   : > { %1150 = vmatprep.subr.bf16.mxu0 %v6032_v27  ;;  %1873 = vrot.lane.b32.xlu1 %v5938_v14, %s5785_s29 }
  0x96   : > { %1865 = vrot.lane.b32.xlu0 %v5932_v13, %s5785_s29  ;;  %s7435_s29 = scalar_lea.vmem %s7503_s4, %s7355_s17 }
  0x97   : > { %v6039_v28 = vpop.permute.xlu1 %456  ;;  %v455_v29 = vpop.permute.xlu0 %454 }
  0x98   : > { %v473_v30 = vsel %vm468_vm0, %v455_v29, %v6039_v28 }
  0x99   : > { %521 = vmatprep.subr.bf16.mxu1 %v473_v30  ;;  %3019 = vrot.lane.b32.xlu1 %v5854_v1, %s5788_s7  ;;  %v6187_v30 = vld [vmem:[%s7500_s1 + $0x58] sm:$0xff]  }
  0x9a   : > { %3017 = vrot.lane.b32.xlu0 %v5847_v0, %s5788_s7 }
  0x9b   : > { %v453_v31 = vpop.permute.xlu1 %452  ;;  %v1084_v32 = vpop.permute.xlu0 %1083 }
  0x9c   : > { %v472_v33 = vsel %vm468_vm0, %v453_v31, %v455_v29  ;;  %v6049_v34 = vsel %vm1099_vm1, %v1084_v32, %v1086_v26 }
  0x9d   : > { %522 = vmatpush1.bf16.msra.mxu1 %v472_v33  ;;  %1151 = vmatpush1.bf16.msra.mxu0 %v6049_v34 }
  0x9e   : > { %2245 = vrot.lane.b32.xlu0 %v5925_v12, %s5786_s30  ;;  %3015 = vrot.lane.b32.xlu1 %v5861_v2, %s5788_s7 }
  0x9f   : > { %v1094_v35 = vpop.permute.xlu1 %1093  ;;  %v1092_v36 = vpop.permute.xlu0 %1091 }
  0xa0   : > { %v1106_v37 = vsel %vm1099_vm1, %v1092_v36, %v1094_v35  ;;  %v6207_v36 = vld [vmem:[%s7500_s1 + $0xa0] sm:$0xff]  }
  0xa1   : > { %v6070_v41 = vsel %vm509_vm2, %v1106_v37, 0 }
  0xa2   : > { %3025 = vrot.lane.b32.xlu0 %v5867_v4, %s5788_s7  ;;  %3027 = vrot.lane.b32.xlu1 %v5864_v3, %s5788_s7 }
  0xa3   : > { %v461_v38 = vpop.permute.xlu1 %460  ;;  %v6061_v39 = vpop.permute.xlu0 %1095 }
  0xa4   : > { %v6065_v40 = vsel %vm1099_vm1, %v1094_v35, %v6061_v39 }
  0xa5   : > { %4479 = vmatprep.subr.msk.bf16.mxu0 %vm509_vm2, %v6065_v40 }
  0xa6   : > { %1153 = vmatpush1.bf16.msra.mxu0 %v6070_v41  ;;  %2253 = vrot.lane.b32.xlu0 %v5932_v13, %s5786_s30 }
  0xa7   : > { %v6080_v43 = vpop.permute.xlu1 %464  ;;  %v463_v44 = vpop.permute.xlu0 %462  ;;  %3023 = vrot.lane.b32.xlu1 %v5878_v5, %s5788_s7 }
  0xa8   : > { %v475_v45 = vsel %vm468_vm0, %v461_v38, %v463_v44  ;;  %v476_v46 = vsel %vm468_vm0, %v463_v44, %v6080_v43 }
  0xa9   : > { %4413 = vmatprep.subr.msk.bf16.mxu1 %vm509_vm2, %v476_v46  ;;  %4480 = vmatmul.mubr.msk.bf16.vlgmr.msra.gmra.mrb[0].mxu0 %vm484_vm3, %v6075_v42  ;;  %v511_v47 = vsel %vm509_vm2, %v475_v45, 0 }
  0xaa   : > { %524 = vmatpush1.bf16.msra.mxu1 %v511_v47  ;;  %1190 = vmatprep.mubr.bf16.mxu0 %v7509_v10 }
  0xab   : > { %v6097_v49 = vpop.permute.xlu1 %1467  ;;  %v1466_v50 = vpop.permute.xlu0 %1465  ;;  %3033 = vrot.lane.b32.xlu1 %v5890_v8, %s5788_s7  ;;  %3031 = vrot.lane.b32.xlu0 %v5892_v9, %s5788_s7 }
  0xac   : > { %v1489_v51 = vsel %vm1487_vm4, %v1466_v50, %v6097_v49 }
  0xad   : > { %4414 = vmatmul.mubr.msk.bf16.vlgmr.msra.gmra.mrb[0].mxu1 %vm484_vm3, %v6094_v48  ;;  %1536 = vmatprep.subr.bf16.mxu0 %v1489_v51 }
  0xae   : > { %561 = vmatprep.mubr.bf16.mxu1 %v7509_v10 }
  0xaf   : > { %v1474_v53 = vpop.permute.xlu1 %1473  ;;  %v1464_v54 = vpop.permute.xlu0 %1463  ;;  %2261 = vrot.lane.b32.xlu1 %v5938_v14, %s5786_s30  ;;  %3035 = vrot.lane.b32.xlu0 %v5902_v11, %s5788_s7 }
  0xb0   : > { %v1488_v55 = vsel %vm1487_vm4, %v1464_v54, %v1466_v50  ;;  %v6246_v50 = vld [vmem:[%s7500_s1 + $0x68] sm:$0xff]  }
  0xb1   : > { %4481 = vmatmul.mubr.msk.bf16.gmra.mrb[4].mxu0 %vm484_vm3, %v6110_v52 }
  0xb2   : > { %1537 = vmatpush1.bf16.msra.mxu0 %v1488_v55  ;;  %1200 = vmatprep.mubr.bf16.mxu0 %v7509_v10 }
  0xb3   : > { %v1472_v57 = vpop.permute.xlu1 %1471  ;;  %v6126_v58 = vpop.permute.xlu0 %1475  ;;  %2633 = vrot.lane.b32.xlu0 %v5925_v12, %s5787_s6  ;;  %2641 = vrot.lane.b32.xlu1 %v5932_v13, %s5787_s6 }
  0xb4   : > { %v1491_v59 = vsel %vm1487_vm4, %v1472_v57, %v1474_v53  ;;  %v1492_v60 = vsel %vm1487_vm4, %v1474_v53, %v6126_v58 }
  0xb5   : > { %4415 = vmatmul.mubr.msk.bf16.gmra.mrb[4].mxu1 %vm484_vm3, %v6123_v56  ;;  %1538 = vmatprep.subr.bf16.mxu0 %v1492_v60 }
  0xb6   : > { %1539 = vmatpush1.bf16.msra.mxu0 %v1491_v59  ;;  %571 = vmatprep.mubr.bf16.mxu1 %v7509_v10 }
  0xb7   : > { %v1482_v62 = vpop.permute.xlu1 %1481  ;;  %v1480_v63 = vpop.permute.xlu0 %1479  ;;  %2649 = vrot.lane.b32.xlu0 %v5938_v14, %s5787_s6  ;;  %3405 = vrot.lane.b32.xlu1 %v5847_v0, %s5789_s22 }
  0xb8   : > { %v1494_v6 = vsel %vm1487_vm4, %v1480_v63, %v1482_v62 }
  0xb9   : > { %4482 = vmatmul.mubr.msk.bf16.gmra.mrb[8].mxu0 %vm484_vm3, %v6140_v61  ;;  %v1528_v19 = vsel %vm509_vm2, %v1494_v6, 0 }
  0xba   : > { %1210 = vmatprep.mubr.bf16.mxu0 %v7509_v10 }
  0xbb   : > { %v451_v15 = vpop.permute.xlu1 %450  ;;  %v6156_v16 = vpop.permute.xlu0 %1483  ;;  %3021 = vrot.lane.b32.xlu1 %v5925_v12, %s5788_s7  ;;  %3407 = vrot.lane.b32.xlu0 %v5854_v1, %s5789_s22 }
  0xbc   : > { %v1495_v21 = vsel %vm1487_vm4, %v1482_v62, %v6156_v16  ;;  %v471_v22 = vsel %vm468_vm0, %v6004_v17, %v451_v15  ;;  %v6290_v15 = vld [vmem:[%s7500_s1 + $0xc8] sm:$0xff]  }
  0xbd   : > { %4416 = vmatmul.mubr.msk.bf16.gmra.mrb[8].mxu1 %vm484_vm3, %v6153_v7  ;;  %4843 = vmatprep.subr.bf16.mxu1 %v471_v22 }
  0xbe   : > { %4520 = vmatprep.subr.msk.bf16.mxu0 %vm509_vm2, %v1495_v21  ;;  %4844 = vmatpush3.bf16.msra.mxu1 %v471_v22 }
  0xbf   : > { %1541 = vmatpush1.bf16.msra.mxu0 %v1528_v19  ;;  %v467_v26 = vpop.permute.xlu1 %466  ;;  %v459_v29 = vpop.permute.xlu0 %458  ;;  %581 = vmatprep.mubr.bf16.mxu1 %v7509_v10 }
  0xc0   : > { %v474_v17 = vsel %vm468_vm0, %v6039_v28, %v459_v29  ;;  %3413 = vrot.lane.b32.xlu1 %v5867_v4, %s5789_s22  ;;  %3403 = vrot.lane.b32.xlu0 %v5861_v2, %s5789_s22  ;;  %v477_v31 = vsel %vm468_vm0, %v6080_v43, %v467_v26  ;;  %v6220_v43 = vld [vmem:[%s7500_s1 + $0x60] sm:$0xff]   ;;  %v5508_v29 = vld [vmem:[%s7500_s1 + $0x78] sm:$0xff]  }
  0xc1   : > { %4845 = vmatprep.subr.bf16.mxu1 %v474_v17  ;;  %4483 = vmatmul.mubr.msk.bf16.gmra.mrb[12].mxu0 %vm484_vm3, %v6172_v23  ;;  %v517_v35 = vsel %vm509_vm2, %v477_v31, 0 }
  0xc2   : > { %4846 = vmatpush3.bf16.msra.mxu1 %v474_v17  ;;  %1220 = vmatprep.mubr.bf16.mxu0 %v7509_v10 }
  0xc3   : > { %v6192_v28 = vpop.permute.xlu1 %1855  ;;  %5431 = vmatprep.subr.msk.bf16.mxu1 %vm509_vm2, %v477_v31  ;;  %v1854_v32 = vpop.permute.xlu0 %1853 }
  0xc4   : > { %v1877_v33 = vsel %vm1875_vm5, %v1854_v32, %v6192_v28  ;;  %3029 = vrot.lane.b32.xlu1 %v5932_v13, %s5788_s7  ;;  %3415 = vrot.lane.b32.xlu0 %v5864_v3, %s5789_s22 }
  0xc5   : > { %4417 = vmatmul.mubr.msk.bf16.gmra.mrb[12].mxu1 %vm484_vm3, %v6187_v30  ;;  %1924 = vmatprep.subr.bf16.mxu0 %v1877_v33 }
  0xc6   : > { %4848 = vmatpush3.bf16.msra.mxu1 %v517_v35  ;;  %591 = vmatprep.mubr.bf16.mxu1 %v7509_v10 }
  0xc7   : > { %v1862_v37 = vpop.permute.xlu1 %1861  ;;  %v1852_v38 = vpop.permute.xlu0 %1851  ;;  %808 = vmatprep.subr.bf16.mxu1 %v5847_v0  ;;  %v6234_v0 = vld [vmem:[%s7500_s1 + $0xa8] sm:$0xff]  }
  0xc8   : > { %3411 = vrot.lane.b32.xlu0 %v5878_v5, %s5789_s22  ;;  %3419 = vrot.lane.b32.xlu1 %v5892_v9, %s5789_s22  ;;  %v1876_v54 = vsel %vm1875_vm5, %v1852_v38, %v1854_v32  ;;  %v6316_v32 = vld [vmem:[%s7500_s1 + $0xd0] sm:$0xff]  }
  0xc9   : > { %4484 = vmatmul.mubr.msk.bf16.gmra.mrb[16].mxu0 %vm484_vm3, %v6207_v36 }
  0xca   : > { %1230 = vmatprep.mubr.bf16.mxu0 %v7509_v10 }
  0xcb   : > { %v1860_v44 = vpop.permute.xlu1 %1859  ;;  %v6223_v45 = vpop.permute.xlu0 %1863 }
  0xcc   : > { %3421 = vrot.lane.b32.xlu0 %v5890_v8, %s5789_s22  ;;  %3423 = vrot.lane.b32.xlu1 %v5902_v11, %s5789_s22  ;;  %v1879_v59 = vsel %vm1875_vm5, %v1860_v44, %v1862_v37 }
  0xcd   : > { %4418 = vmatmul.mubr.msk.bf16.gmra.mrb[16].mxu1 %vm484_vm3, %v6220_v43 }
  0xce   : > { %601 = vmatprep.mubr.bf16.mxu1 %v7509_v10 }
  0xcf   : > { %v1870_v46 = vpop.permute.xlu1 %1869  ;;  %v1868_v47 = vpop.permute.xlu0 %1867 }
  0xd0   : > { %3037 = vrot.lane.b32.xlu0 %v5938_v14, %s5788_s7  ;;  %3409 = vrot.lane.b32.xlu1 %v5925_v12, %s5789_s22  ;;  %v6262_v12 = vld [vmem:[%s7500_s1 + $0xc0] sm:$0xff]   ;;  %v1882_v63 = vsel %vm1875_vm5, %v1868_v47, %v1870_v46 }
  0xd1   : > { %4485 = vmatmul.mubr.msk.bf16.gmra.mrb[20].mxu0 %vm484_vm3, %v6234_v0  ;;  %v1916_v19 = vsel %vm509_vm2, %v1882_v63, 0 }
  0xd2   : > { %1568 = vmatprep.mubr.bf16.mxu0 %v7509_v10 }
  0xd3   : > { %v6249_v51 = vpop.permute.xlu1 %2241  ;;  %v6251_v53 = vpop.permute.xlu0 %1871 }
  0xd4   : > { %3417 = vrot.lane.b32.xlu0 %v5932_v13, %s5789_s22  ;;  %3425 = vrot.lane.b32.xlu1 %v5938_v14, %s5789_s22  ;;  %v1880_v13 = vsel %vm1875_vm5, %v1862_v37, %v6223_v45  ;;  %v5506_v14 = vld [vmem:[%s7500_s1 + $0x70] sm:$0xff]   ;;  %v1883_v6 = vsel %vm1875_vm5, %v1870_v46, %v6251_v53 }
  0xd5   : > { %4419 = vmatmul.mubr.msk.bf16.gmra.mrb[20].mxu1 %vm484_vm3, %v6246_v50 }
  0xd6   : > { %611 = vmatprep.mubr.bf16.mxu1 %v7509_v10 }
  0xd7   : > { %v6266_v55 = vpop.permute.xlu1 %2239  ;;  %v6268_v57 = vpop.permute.xlu0 %2243 }
  0xd8   : > { %7519 = vst [vmem:[#allocation2_spill] sm:$0xff] %v6268_v57  ;;  %v2265_v26 = vsel %vm2263_vm6, %v6249_v51, %v6268_v57  ;;  %v7527_v57 = vmov 0  }
  0xd9   : > { %4521 = vmatmul.mubr.msk.bf16.vlgmr.msra.gmra.mrb[0].mxu0 %vm484_vm3, %v6262_v12 }
  0xda   : > { %1578 = vmatprep.mubr.bf16.mxu0 %v7509_v10  ;;  %1925 = vmatpush1.bf16.msra.mxu0 %v1876_v54 }
  0xdb   : > { %v6279_v60 = vpop.permute.xlu1 %2251  ;;  %v6281_v62 = vpop.permute.xlu0 %2249  ;;  %1926 = vmatprep.subr.bf16.mxu0 %v1880_v13 }
  0xdc   : > { %7520 = vst [vmem:[#allocation3_spill] sm:$0xff] %v6279_v60 }
  0xdd   : > { %4420 = vmatmul.mubr.msk.bf16.gmra.mrb[24].mxu1 %vm484_vm3, %v5506_v14 }
  0xde   : > { %621 = vmatprep.mubr.bf16.mxu1 %v7509_v10  ;;  %1927 = vmatpush1.bf16.msra.mxu0 %v1879_v59 }
  0xdf   : > { %v6294_v21 = vpop.permute.xlu1 %2255  ;;  %v6296_v22 = vpop.permute.xlu0 %2247  ;;  %4561 = vmatprep.subr.msk.bf16.mxu0 %vm509_vm2, %v1883_v6 }
  0xe1   : > { %4522 = vmatmul.mubr.msk.bf16.gmra.mrb[4].mxu0 %vm484_vm3, %v6290_v15 }
  0xe2   : > { %1588 = vmatprep.mubr.bf16.mxu0 %v7509_v10  ;;  %1929 = vmatpush1.bf16.msra.mxu0 %v1916_v19  ;;  %v6414_v19 = vld [vmem:[%s7500_s1] sm:$0xff]  }
  0xe3   : > { %v6308_v17 = vpop.permute.xlu1 %2259  ;;  %v6310_v31 = vpop.permute.xlu0 %2257  ;;  %2312 = vmatprep.subr.bf16.mxu0 %v2265_v26 }
  0xe4   : > { %7521 = vst [vmem:[#allocation4_spill] sm:$0xff] %v6308_v17 }
  0xe5   : > { %4421 = vmatmul.mubr.msk.bf16.gmra.mrb[28].mxu1 %vm484_vm3, %v5508_v29 }
  0xe6   : > { %4849 = vmatprep.mubr.msk.bf16.mxu1 %vm484_vm3, %v6094_v48  ;;  %v6336_v48 = vld [vmem:[%s7500_s1 + $0xd8] sm:$0xff]  }
  0xe7   : > { %v6320_v33 = vpop.permute.xlu1 %1089  ;;  %v6322_v35 = vpop.permute.xlu0 %1081 }
  0xe9   : > { %4523 = vmatmul.mubr.msk.bf16.gmra.mrb[8].mxu0 %vm484_vm3, %v6316_v32 }
  0xea   : > { %1598 = vmatprep.mubr.bf16.mxu0 %v7509_v10 }
  0xeb   : > { %v6327_v37 = vpop.permute.xlu1 %2629  ;;  %v6329_v38 = vpop.permute.xlu0 %1097 }
  0xed   : > { %4850 = vmatmul.mubr.msk.bf16.vlgmr.msra.gmra.mrb[32].mxu1 %vm484_vm3, %v6123_v56 }
  0xee   : > { %4853 = vmatprep.mubr.msk.bf16.mxu1 %vm484_vm3, %v6153_v7  ;;  %809 = vmatpush1.bf16.msra.mxu1 %v5861_v2  ;;  %v800_v2 = vsel %vm509_vm2, %v5892_v9, 0 }
  0xef   : > { %v6341_v44 = vpop.permute.xlu1 %1469  ;;  %v6343_v46 = vpop.permute.xlu0 %2631  ;;  %810 = vmatprep.subr.bf16.mxu1 %v5867_v4  ;;  %v6363_v4 = vld [vmem:[%s7500_s1 + $0xe0] sm:$0xff]  }
  0xf0   : > { %7522 = vst [vmem:[#allocation5_spill] sm:$0xff] %v6363_v4 }
  0xf1   : > { %4524 = vmatmul.mubr.msk.bf16.gmra.mrb[12].mxu0 %vm484_vm3, %v6336_v48 }
  0xf2   : > { %1608 = vmatprep.mubr.bf16.mxu0 %v7509_v10  ;;  %811 = vmatpush1.bf16.msra.mxu1 %v5878_v5 }
  0xf3   : > { %v6350_v56 = vpop.permute.xlu1 %2637  ;;  %v6352_v47 = vpop.permute.xlu0 %2627  ;;  %4438 = vmatprep.subr.msk.bf16.mxu1 %vm509_vm2, %v5890_v8 }
  0xf5   : > { %4854 = vmatmul.mubr.msk.bf16.gmra.mrb[36].mxu1 %vm484_vm3, %v6187_v30  ;;  %v6384_v30 = vld [vmem:[%s7500_s1 + $0xe8] sm:$0xff]  }
  0xf6   : > { %4857 = vmatprep.mubr.msk.bf16.mxu1 %vm484_vm3, %v6220_v43  ;;  %813 = vmatpush1.bf16.msra.mxu1 %v800_v2  ;;  %7523 = vst [vmem:[#allocation6_spill] sm:$0xff] %v6384_v30 }
  0xf7   : > { %v6367_v5 = vpop.permute.xlu1 %1477  ;;  %v6369_v7 = vpop.permute.xlu0 %2639  ;;  %4865 = vmatprep.subr.bf16.mxu1 %v5854_v1 }
  0xf9   : > { %4525 = vmatmul.mubr.msk.bf16.gmra.mrb[16].mxu0 %vm484_vm3, %v6363_v4  ;;  %v6476_v4 = vld [vmem:[%s7500_s1 + $0x10] sm:$0xff]  }
  0xfa   : > { %1618 = vmatprep.mubr.bf16.mxu0 %v7509_v10 }
  0xfb   : > { %v6375_v8 = vpop.permute.xlu1 %2643  ;;  %v6377_v9 = vpop.permute.xlu0 %2635 }
  0xfd   : > { %4858 = vmatmul.mubr.msk.bf16.gmra.mrb[40].mxu1 %vm484_vm3, %v6246_v50  ;;  %v6402_v50 = vld [vmem:[%s7500_s1 + $0xf0] sm:$0xff]  }
  0xfe   : > { %4861 = vmatprep.mubr.msk.bf16.mxu1 %vm484_vm3, %v5506_v14  ;;  %7524 = vst [vmem:[#allocation7_spill] sm:$0xff] %v6402_v50 }
  0xff   : > { %v6387_v43 = vpop.permute.xlu1 %2647 }
 0x100   : > { %v6389_v54 = vpop.permute.xlu0 %2645 }
 0x101   : > { %4526 = vmatmul.mubr.msk.bf16.gmra.mrb[20].mxu0 %vm484_vm3, %v6384_v30 }
 0x102   : > { %1628 = vmatprep.mubr.bf16.mxu0 %v7509_v10 }
 0x103   : > { %v6394_v13 = vpop.permute.xlu1 %1857 }
 0x104   : > { %v6396_v59 = vpop.permute.xlu0 %1485 }
 0x105   : > { %4862 = vmatmul.mubr.msk.bf16.gmra.mrb[44].mxu1 %vm484_vm3, %v5508_v29 }
 0x106   : > { %840 = vmatprep.mubr.bf16.mxu1 %v7509_v10 }
 0x107   : > { %v1874_v14 = vpop.permute.xlu1 %1873 }
 0x108   : > { %v1866_v63 = vpop.permute.xlu0 %1865  ;;  %v6407_v6 = vsel %vm1875_vm5, %v6251_v53, %v1874_v14  ;;  %v6430_v53 = vld [vmem:[%s7500_s1 + $0xf8] sm:$0xff]  }
 0x109   : > { %4527 = vmatmul.mubr.msk.bf16.gmra.mrb[24].mxu0 %vm484_vm3, %v6402_v50  ;;  %v6418_v26 = vsel %vm1875_vm5, %v6223_v45, %v1866_v63  ;;  %7525 = vst [vmem:[#allocation8_spill] sm:$0xff] %v6430_v53  ;;  %v6444_v63 = vld [vmem:[%s7500_s1 + $0x8] sm:$0xff]  }
 0x10a   : > { %1638 = vmatprep.mubr.bf16.mxu0 %v7509_v10 }
 0x10b   : > { %v6421_v29 = vpop.permute.xlu1 %3019 }
 0x10c   : > { %v6423_v2 = vpop.permute.xlu0 %3017 }
 0x10d   : > { %4439 = vmatmul.mubr.msk.bf16.vlgmr.msra.gmra.mrb[0].mxu1 %vm484_vm3, %v6414_v19 }
 0x10e   : > { %4866 = vmatpush3.bf16.msra.mxu1 %v5854_v1  ;;  %850 = vmatprep.mubr.bf16.mxu1 %v7509_v10  ;;  %v806_v1 = vsel %vm509_vm2, %v5902_v11, 0 }
 0x10f   : > { %4867 = vmatprep.subr.bf16.mxu1 %v5864_v3 }
 0x110   : > { %v6435_v45 = vpop.permute.xlu0 %2245  ;;  %v6437_v14 = vpop.permute.xlu1 %3015 }
 0x111   : > { %4528 = vmatmul.mubr.msk.bf16.gmra.mrb[28].mxu0 %vm484_vm3, %v6430_v53  ;;  %v6461_v53 = vld [vmem:[%s7500_s1 + $0x100] sm:$0xff]  }
 0x112   : > { %4868 = vmatpush3.bf16.msra.mxu1 %v5864_v3  ;;  %1956 = vmatprep.mubr.bf16.mxu0 %v7509_v10  ;;  %v2264_v3 = vsel %vm2263_vm6, %v6266_v55, %v6249_v51  ;;  %v2270_v51 = vsel %vm2263_vm6, %v6294_v21, %v6310_v31  ;;  %v2271_v55 = vsel %vm2263_vm6, %v6310_v31, %v6308_v17  ;;  %v5520_v31 = vld [vmem:[%s7500_s1 + $0x18] sm:$0xff]  }
 0x113   : > { %5432 = vmatprep.subr.msk.bf16.mxu1 %vm509_vm2, %v5902_v11  ;;  %v2268_v11 = vsel %vm2263_vm6, %v6281_v62, %v6279_v60  ;;  %v2304_v21 = vsel %vm509_vm2, %v2270_v51, 0 }
 0x114   : > { %v6452_v50 = vpop.permute.xlu0 %3025  ;;  %v6454_v30 = vpop.permute.xlu1 %3027 }
 0x115   : > { %4440 = vmatmul.mubr.msk.bf16.gmra.mrb[4].mxu1 %vm484_vm3, %v6444_v63 }
 0x116   : > { %4870 = vmatpush3.bf16.msra.mxu1 %v806_v1  ;;  %860 = vmatprep.mubr.bf16.mxu1 %v7509_v10 }
 0x117   : > { %5041 = vmatprep.subr.bf16.mxu1 %v6012_v20  ;;  %v2267_v20 = vsel %vm2263_vm6, %v6296_v22, %v6281_v62  ;;  %v2653_v22 = vsel %vm2651_vm7, %v6327_v37, %v6343_v46 }
 0x118   : > { %v6478_v1 = vpop.permute.xlu0 %2253 }
 0x119   : > { %4562 = vmatmul.mubr.msk.bf16.vlgmr.msra.gmra.mrb[0].mxu0 %vm484_vm3, %v6461_v53  ;;  %7526 = vst [vmem:[#allocation9_spill] sm:$0xff] %v6478_v1  ;;  %v6480_v10 = vpop.permute.xlu1 %3023 }
 0x11a   : > { %1966 = vmatprep.mubr.bf16.mxu0 %v7527_v57  ;;  %2313 = vmatpush1.bf16.msra.mxu0 %v2264_v3  ;;  %v6497_v3 = vld [vmem:[%s7500_s1 + $0x108] sm:$0xff]  }
 0x11b   : > { %2314 = vmatprep.subr.bf16.mxu0 %v2268_v11  ;;  %7528 = vst [vmem:[#allocation10_spill] sm:$0xff] %v6497_v3 }
 0x11d   : > { %4441 = vmatmul.mubr.msk.bf16.gmra.mrb[8].mxu1 %vm484_vm3, %v6476_v4  ;;  %v6499_v60 = vpop.permute.xlu1 %3033  ;;  %v6501_v62 = vpop.permute.xlu0 %3031 }
 0x11e   : > { %870 = vmatprep.mubr.bf16.mxu1 %v7527_v57  ;;  %2315 = vmatpush1.bf16.msra.mxu0 %v2267_v20  ;;  %v6523_v20 = vld [vmem:[%s7500_s1 + $0x110] sm:$0xff]  }
 0x11f   : > { %4602 = vmatprep.subr.msk.bf16.mxu0 %vm509_vm2, %v2271_v55 }
 0x121   : > { %4563 = vmatmul.mubr.msk.bf16.gmra.mrb[4].mxu0 %vm484_vm3, %v6497_v3  ;;  %v6514_v11 = vpop.permute.xlu1 %2261  ;;  %v6516_v17 = vpop.permute.xlu0 %3035 }
 0x122   : > { %7529 = vst [vmem:[#allocation11_spill] sm:$0xff] %v6514_v11  ;;  %1976 = vmatprep.mubr.bf16.mxu0 %v7527_v57  ;;  %2317 = vmatpush1.bf16.msra.mxu0 %v2304_v21  ;;  %v5522_v21 = vld [vmem:[%s7500_s1 + $0x20] sm:$0xff]  }
 0x123   : > { %2700 = vmatprep.subr.bf16.mxu0 %v2653_v22 }
 0x125   : > { %4442 = vmatmul.mubr.msk.bf16.gmra.mrb[12].mxu1 %vm484_vm3, %v5520_v31  ;;  %v2634_v51 = vpop.permute.xlu0 %2633  ;;  %v2642_v55 = vpop.permute.xlu1 %2641 }
 0x126   : > { %880 = vmatprep.mubr.bf16.mxu1 %v7527_v57  ;;  %v6528_v11 = vsel %vm2651_vm7, %v6343_v46, %v2634_v51  ;;  %v6532_v1 = vsel %vm2651_vm7, %v6369_v7, %v2642_v55  ;;  %v6548_v46 = vld [vmem:[%s7500_s1 + $0x118] sm:$0xff]   ;;  %v5524_v51 = vld [vmem:[%s7500_s1 + $0x28] sm:$0xff]   ;;  %v6561_v55 = vld [vmem:[%s7500_s1 + $0x120] sm:$0xff]  }
 0x127   : > { %7530 = vst [vmem:[#allocation12_spill] sm:$0xff] %v6528_v11  ;;  %7531 = vst [vmem:[#allocation13_spill] sm:$0xff] %v6532_v1  ;;  %v5528_v1 = vld [vmem:[%s7500_s1 + $0x38] sm:$0xff]   ;;  %v6587_v11 = vld [vmem:[%s7500_s1 + $0x130] sm:$0xff]  }
 0x129   : > { %4564 = vmatmul.mubr.msk.bf16.gmra.mrb[8].mxu0 %vm484_vm3, %v6523_v20  ;;  %v2650_v22 = vpop.permute.xlu0 %2649 }
 0x12a   : > { %1986 = vmatprep.mubr.bf16.mxu0 %v7527_v57  ;;  %v6542_v3 = vsel %vm2651_vm7, %v6387_v43, %v2650_v22  ;;  %v5526_v22 = vld [vmem:[%s7500_s1 + $0x30] sm:$0xff]  }
 0x12b   : > { %7532 = vst [vmem:[#allocation14_spill] sm:$0xff] %v6542_v3  ;;  %v6574_v3 = vld [vmem:[%s7500_s1 + $0x128] sm:$0xff]  }
 0x12c   : > { %7533 = vst [vmem:[#allocation15_spill] sm:$0xff] %v6574_v3 }
 0x12d   : > { %4443 = vmatmul.mubr.msk.bf16.gmra.mrb[16].mxu1 %vm484_vm3, %v5522_v21 }
 0x12e   : > { %890 = vmatprep.mubr.bf16.mxu1 %v7527_v57 }
 0x131   : > { %4565 = vmatmul.mubr.msk.bf16.gmra.mrb[12].mxu0 %vm484_vm3, %v6548_v46 }
 0x132   : > { %1996 = vmatprep.mubr.bf16.mxu0 %v7527_v57 }
 0x135   : > { %4444 = vmatmul.mubr.msk.bf16.gmra.mrb[20].mxu1 %vm484_vm3, %v5524_v51 }
 0x136   : > { %900 = vmatprep.mubr.bf16.mxu1 %v7527_v57 }
 0x139   : > { %4566 = vmatmul.mubr.msk.bf16.gmra.mrb[16].mxu0 %vm484_vm3, %v6561_v55 }
 0x13a   : > { %2006 = vmatprep.mubr.bf16.mxu0 %v7527_v57 }
 0x13d   : > { %4445 = vmatmul.mubr.msk.bf16.gmra.mrb[24].mxu1 %vm484_vm3, %v5526_v22 }
 0x13e   : > { %910 = vmatprep.mubr.bf16.mxu1 %v7527_v57 }
 0x141   : > { %4567 = vmatmul.mubr.msk.bf16.gmra.mrb[20].mxu0 %vm484_vm3, %v6574_v3  ;;  %v6599_v3 = vld [vmem:[%s7500_s1 + $0x138] sm:$0xff]  }
 0x142   : > { %2016 = vmatprep.mubr.bf16.mxu0 %v7527_v57 }
 0x145   : > { %4446 = vmatmul.mubr.msk.bf16.gmra.mrb[28].mxu1 %vm484_vm3, %v5528_v1 }
 0x146   : > { %4871 = vmatprep.mubr.msk.bf16.mxu1 %vm484_vm3, %v6414_v19  ;;  %v1490_v19 = vsel %vm1487_vm4, %v6097_v49, %v6341_v44  ;;  %v1493_v49 = vsel %vm1487_vm4, %v6126_v58, %v6367_v5  ;;  %v6728_v58 = vld [vmem:[%s7500_s1 + $0x170] sm:$0xff]   ;;  %v6780_v44 = vld [vmem:[%s7500_s1 + $0x188] sm:$0xff]   ;;  %v6786_v5 = vpop.permute.xlu1 %3405 }
 0x149   : > { %4568 = vmatmul.mubr.msk.bf16.gmra.mrb[24].mxu0 %vm484_vm3, %v6587_v11 }
 0x14a   : > { %2026 = vmatprep.mubr.bf16.mxu0 %v7527_v57 }
 0x14d   : > { %4872 = vmatmul.mubr.msk.bf16.vlgmr.msra.gmra.mrb[32].mxu1 %vm484_vm3, %v6444_v63  ;;  %v7539_v63 = vld [vmem:[#allocation10_spill] sm:$0xff] }
 0x14e   : > { %5044 = vmatpush1.bf16.msra.mxu1 %v6021_v24  ;;  %4875 = vmatprep.mubr.msk.bf16.mxu1 %vm484_vm3, %v6476_v4  ;;  %v6615_v24 = vld [vmem:[%s7500_s1 + $0x140] sm:$0xff]   ;;  %v6659_v4 = vld [vmem:[%s7500_s1 + $0x150] sm:$0xff]  }
 0x14f   : > { %5042 = vmatprep.subr.bf16.mxu1 %v6032_v27  ;;  %v1102_v27 = vsel %vm1099_vm1, %v6006_v18, %v6322_v35  ;;  %v2655_v18 = vsel %vm2651_vm7, %v6377_v9, %v6350_v56  ;;  %v2659_v35 = vsel %vm2651_vm7, %v6389_v54, %v6387_v43  ;;  %v1105_v9 = vsel %vm1099_vm1, %v6028_v25, %v6320_v33  ;;  %v5536_v43 = vld [vmem:[%s7500_s1 + $0xb8] sm:$0xff]   ;;  %v6693_v33 = vld [vmem:[%s7500_s1 + $0x160] sm:$0xff]  }
 0x151   : > { %4569 = vmatmul.mubr.msk.bf16.gmra.mrb[28].mxu0 %vm484_vm3, %v6599_v3 }
 0x152   : > { %5045 = vmatpush1.bf16.msra.mxu1 %v6049_v34  ;;  %2344 = vmatprep.mubr.bf16.mxu0 %v7527_v57  ;;  %v2652_v34 = vsel %vm2651_vm7, %v6352_v47, %v6327_v37  ;;  %v6644_v37 = vld [vmem:[%s7500_s1 + $0x148] sm:$0xff]   ;;  %v3041_v47 = vsel %vm3039_vm8, %v6423_v2, %v6421_v29 }
 0x153   : > { %5043 = vmatprep.subr.msk.bf16.mxu1 %vm509_vm2, %v6065_v40  ;;  %v2656_v40 = vsel %vm2651_vm7, %v6350_v56, %v6369_v7  ;;  %v5534_v7 = vld [vmem:[%s7500_s1 + $0xb0] sm:$0xff]  }
 0x155   : > { %4876 = vmatmul.mubr.msk.bf16.gmra.mrb[36].mxu1 %vm484_vm3, %v5520_v31  ;;  %v7541_v31 = vld [vmem:[#allocation3_spill] sm:$0xff] }
 0x156   : > { %5046 = vmatpush1.bf16.msra.mxu1 %v6070_v41  ;;  %4879 = vmatprep.mubr.msk.bf16.mxu1 %vm484_vm3, %v5522_v21  ;;  %v2658_v41 = vsel %vm2651_vm7, %v6375_v8, %v6389_v54  ;;  %v6672_v8 = vld [vmem:[%s7500_s1 + $0x158] sm:$0xff]   ;;  %v1108_v54 = vsel %vm1099_vm1, %v6061_v39, %v6329_v38  ;;  %v6708_v39 = vld [vmem:[%s7500_s1 + $0x168] sm:$0xff]   ;;  %v3047_v38 = vsel %vm3039_vm8, %v6499_v60, %v6516_v17 }
 0x157   : > { %4887 = vmatprep.subr.bf16.mxu1 %v1102_v27  ;;  %v2692_v56 = vsel %vm509_vm2, %v2658_v41, 0  ;;  %v1146_v25 = vsel %vm509_vm2, %v1108_v54, 0  ;;  %v7545_v41 = vld [vmem:[#allocation15_spill] sm:$0xff] }
 0x159   : > { %4603 = vmatmul.mubr.msk.bf16.vlgmr.msra.gmra.mrb[0].mxu0 %vm484_vm3, %v6615_v24 }
 0x15a   : > { %2354 = vmatprep.mubr.bf16.mxu0 %v7527_v57  ;;  %2701 = vmatpush1.bf16.msra.mxu0 %v2652_v34  ;;  %v6868_v34 = vpop.permute.xlu1 %3021 }
 0x15b   : > { %2702 = vmatprep.subr.bf16.mxu0 %v2656_v40  ;;  %v7544_v40 = vld [vmem:[#allocation12_spill] sm:$0xff] }
 0x15d   : > { %4880 = vmatmul.mubr.msk.bf16.gmra.mrb[40].mxu1 %vm484_vm3, %v5524_v51  ;;  %v7543_v51 = vld [vmem:[#allocation4_spill] sm:$0xff] }
 0x15e   : > { %4883 = vmatprep.mubr.msk.bf16.mxu1 %vm484_vm3, %v5526_v22  ;;  %2703 = vmatpush1.bf16.msra.mxu0 %v2655_v18 }
 0x15f   : > { %4643 = vmatprep.subr.msk.bf16.mxu0 %vm509_vm2, %v2659_v35  ;;  %v6881_v35 = vld [vmem:[%s7500_s1 + $0x1b8] sm:$0xff]  }
 0x161   : > { %4604 = vmatmul.mubr.msk.bf16.gmra.mrb[4].mxu0 %vm484_vm3, %v6644_v37 }
 0x162   : > { %2364 = vmatprep.mubr.bf16.mxu0 %v7527_v57  ;;  %2705 = vmatpush1.bf16.msra.mxu0 %v2692_v56 }
 0x163   : > { %3088 = vmatprep.subr.bf16.mxu0 %v3041_v47  ;;  %v6897_v47 = vld [vmem:[%s7500_s1 + $0x1c0] sm:$0xff]  }
 0x165   : > { %4884 = vmatmul.mubr.msk.bf16.gmra.mrb[44].mxu1 %vm484_vm3, %v5528_v1  ;;  %v6846_v1 = vld [vmem:[%s7500_s1 + $0x1a8] sm:$0xff]  }
 0x166   : > { %1240 = vmatprep.mubr.bf16.mxu1 %v7527_v57 }
 0x169   : > { %4605 = vmatmul.mubr.msk.bf16.gmra.mrb[8].mxu0 %vm484_vm3, %v6659_v4 }
 0x16a   : > { %2374 = vmatprep.mubr.bf16.mxu0 %v7527_v57 }
 0x16d   : > { %4486 = vmatmul.mubr.msk.bf16.vlgmr.msra.gmra.mrb[24].mxu1 %vm484_vm3, %v5534_v7 }
 0x16e   : > { %4888 = vmatpush3.bf16.msra.mxu1 %v1102_v27  ;;  %1250 = vmatprep.mubr.bf16.mxu1 %v7527_v57 }
 0x16f   : > { %4889 = vmatprep.subr.bf16.mxu1 %v1105_v9 }
 0x171   : > { %4606 = vmatmul.mubr.msk.bf16.gmra.mrb[12].mxu0 %vm484_vm3, %v6672_v8 }
 0x172   : > { %4890 = vmatpush3.bf16.msra.mxu1 %v1105_v9  ;;  %2384 = vmatprep.mubr.bf16.mxu0 %v7527_v57 }
 0x173   : > { %5433 = vmatprep.subr.msk.bf16.mxu1 %vm509_vm2, %v1108_v54 }
 0x175   : > { %4487 = vmatmul.mubr.msk.bf16.gmra.mrb[28].mxu1 %vm484_vm3, %v5536_v43 }
 0x176   : > { %4892 = vmatpush3.bf16.msra.mxu1 %v1146_v25  ;;  %4893 = vmatprep.mubr.msk.bf16.mxu1 %vm484_vm3, %v6075_v42  ;;  %v1496_v42 = vsel %vm1487_vm4, %v6156_v16, %v6396_v59  ;;  %v6743_v16 = vld [vmem:[%s7500_s1 + $0x178] sm:$0xff]   ;;  %v7534_v59 = vld [vmem:[#allocation2_spill] sm:$0xff]  ;;  %v3736_v25 = vld [vmem:[%s7501_s2 + $0x10] sm:$0xff] }
 0x177   : > { %4909 = vmatprep.subr.bf16.mxu1 %v1490_v19 }
 0x179   : > { %4607 = vmatmul.mubr.msk.bf16.gmra.mrb[16].mxu0 %vm484_vm3, %v6693_v33 }
 0x17a   : > { %2394 = vmatprep.mubr.bf16.mxu0 %v7527_v57 }
 0x17d   : > { %4894 = vmatmul.mubr.msk.bf16.vlgmr.msra.gmra.mrb[32].mxu1 %vm484_vm3, %v6110_v52  ;;  %v1534_v52 = vsel %vm509_vm2, %v1496_v42, 0 }
 0x17e   : > { %4910 = vmatpush3.bf16.msra.mxu1 %v1490_v19  ;;  %4897 = vmatprep.mubr.msk.bf16.mxu1 %vm484_vm3, %v6140_v61  ;;  %v1878_v61 = vsel %vm1875_vm5, %v6192_v28, %v6394_v13  ;;  %v3040_v28 = vsel %vm3039_vm8, %v6437_v14, %v6423_v2  ;;  %v6807_v13 = vld [vmem:[%s7500_s1 + $0x190] sm:$0xff]   ;;  %v7537_v2 = vld [vmem:[#allocation7_spill] sm:$0xff]  ;;  %v6834_v14 = vld [vmem:[%s7500_s1 + $0x1a0] sm:$0xff]  }
 0x17f   : > { %4911 = vmatprep.subr.bf16.mxu1 %v1493_v49 }
 0x181   : > { %4608 = vmatmul.mubr.msk.bf16.gmra.mrb[20].mxu0 %vm484_vm3, %v6708_v39 }
 0x182   : > { %4912 = vmatpush3.bf16.msra.mxu1 %v1493_v49  ;;  %2404 = vmatprep.mubr.bf16.mxu0 %v7527_v57 }
 0x183   : > { %5434 = vmatprep.subr.msk.bf16.mxu1 %vm509_vm2, %v1496_v42 }
 0x185   : > { %4898 = vmatmul.mubr.msk.bf16.gmra.mrb[36].mxu1 %vm484_vm3, %v6172_v23  ;;  %v6753_v23 = vld [vmem:[%s7500_s1 + $0x180] sm:$0xff]  }
 0x186   : > { %4914 = vmatpush3.bf16.msra.mxu1 %v1534_v52  ;;  %4901 = vmatprep.mubr.msk.bf16.mxu1 %vm484_vm3, %v6207_v36  ;;  %v3044_v36 = vsel %vm3039_vm8, %v6452_v50, %v6454_v30 }
 0x187   : > { %4931 = vmatprep.subr.bf16.mxu1 %v1878_v61 }
 0x189   : > { %4609 = vmatmul.mubr.msk.bf16.gmra.mrb[24].mxu0 %vm484_vm3, %v6728_v58 }
 0x18a   : > { %2414 = vmatprep.mubr.bf16.mxu0 %v7527_v57 }
 0x18d   : > { %4902 = vmatmul.mubr.msk.bf16.gmra.mrb[40].mxu1 %vm484_vm3, %v6234_v0  ;;  %v3043_v0 = vsel %vm3039_vm8, %v6480_v10, %v6452_v50  ;;  %v2266_v50 = vsel %vm2263_vm6, %v7534_v59, %v6435_v45  ;;  %v7538_v45 = vld [vmem:[#allocation8_spill] sm:$0xff] }
 0x18e   : > { %4905 = vmatprep.mubr.msk.bf16.mxu1 %vm484_vm3, %v5534_v7  ;;  %v3735_v7 = vld [vmem:[%s7501_s2 + $0x8] sm:$0xff] }
 0x18f   : > { %3757 = vperm.xlu1 %5476, %v3735_v7  }
 0x191   : > { %4610 = vmatmul.mubr.msk.bf16.gmra.mrb[28].mxu0 %vm484_vm3, %v6743_v16 }
 0x192   : > { %2732 = vmatprep.mubr.bf16.mxu0 %v7527_v57 }
 0x193   : > { %3762 = vperm.xlu1 %5476, %v3736_v25  }
 0x195   : > { %4906 = vmatmul.mubr.msk.bf16.gmra.mrb[44].mxu1 %vm484_vm3, %v5536_v43 }
 0x196   : > { %4915 = vmatprep.mubr.msk.bf16.mxu1 %vm484_vm3, %v6262_v12  ;;  %v3046_v12 = vsel %vm3039_vm8, %v6501_v62, %v6499_v60  ;;  %v6788_v60 = vpop.permute.xlu0 %3407  ;;  %v7540_v62 = vld [vmem:[#allocation9_spill] sm:$0xff] }
 0x197   : > { %v3080_v10 = vsel %vm509_vm2, %v3046_v12, 0  ;;  %v2269_v21 = vsel %vm2263_vm6, %v7541_v31, %v7540_v62 }
 0x199   : > { %4644 = vmatmul.mubr.msk.bf16.vlgmr.msra.gmra.mrb[0].mxu0 %vm484_vm3, %v6753_v23 }
 0x19a   : > { %2742 = vmatprep.mubr.bf16.mxu0 %v7527_v57  ;;  %3089 = vmatpush1.bf16.msra.mxu0 %v3040_v28  ;;  %v3404_v18 = vpop.permute.xlu0 %3403 }
 0x19b   : > { %3090 = vmatprep.subr.bf16.mxu0 %v3044_v36  ;;  %v3738_v36 = vld [vmem:[%s7501_s2 + $0x20] sm:$0xff] }
 0x19c   : > { %3772 = vperm.xlu1 %5476, %v3738_v36   ;;  %v5562_v36 = vld [vmem:[%s7500_s1 + $0x228] sm:$0xff]  }
 0x19d   : > { %4916 = vmatmul.mubr.msk.bf16.vlgmr.msra.gmra.mrb[32].mxu1 %vm484_vm3, %v6290_v15  ;;  %v3429_v15 = vsel %vm3427_vm9, %v6786_v5, %v6788_v60 }
 0x19e   : > { %4932 = vmatpush3.bf16.msra.mxu1 %v1878_v61  ;;  %4919 = vmatprep.mubr.msk.bf16.mxu1 %vm484_vm3, %v6316_v32  ;;  %v1922_v32 = vsel %vm509_vm2, %v6407_v6, 0  ;;  %v6929_v61 = vld [vmem:[%s7500_s1 + $0x1c8] sm:$0xff]  }
 0x19f   : > { %4933 = vmatprep.subr.bf16.mxu1 %v6418_v26  ;;  %3091 = vmatpush1.bf16.msra.mxu0 %v3043_v0  ;;  %v7546_v0 = vld [vmem:[#allocation13_spill] sm:$0xff] }
 0x1a0   : > { %4684 = vmatprep.subr.msk.bf16.mxu0 %vm509_vm2, %v3047_v38 }
 0x1a1   : > { %4645 = vmatmul.mubr.msk.bf16.gmra.mrb[4].mxu0 %vm484_vm3, %v6780_v44 }
 0x1a2   : > { %4934 = vmatpush3.bf16.msra.mxu1 %v6418_v26  ;;  %2752 = vmatprep.mubr.bf16.mxu0 %v7527_v57  ;;  %v7535_v26 = vld [vmem:[#allocation5_spill] sm:$0xff] }
 0x1a3   : > { %5435 = vmatprep.subr.msk.bf16.mxu1 %vm509_vm2, %v6407_v6  ;;  %3093 = vmatpush1.bf16.msra.mxu0 %v3080_v10  ;;  %v6822_v6 = vld [vmem:[%s7500_s1 + $0x198] sm:$0xff]  }
 0x1a4   : > { %3476 = vmatprep.subr.bf16.mxu0 %v3429_v15  ;;  %v3741_v15 = vld [vmem:[%s7501_s2 + $0x38] sm:$0xff] }
 0x1a5   : > { %4920 = vmatmul.mubr.msk.bf16.gmra.mrb[36].mxu1 %vm484_vm3, %v6336_v48  ;;  %v7536_v48 = vld [vmem:[#allocation6_spill] sm:$0xff] }
 0x1a6   : > { %4936 = vmatpush3.bf16.msra.mxu1 %v1922_v32  ;;  %4923 = vmatprep.mubr.msk.bf16.mxu1 %vm484_vm3, %v7535_v26  ;;  %v7547_v32 = vld [vmem:[#allocation14_spill] sm:$0xff]  ;;  %v6972_v26 = vld [vmem:[%s7500_s1 + $0x1d0] sm:$0xff]  }
 0x1a7   : > { %4953 = vmatprep.subr.bf16.mxu1 %v2266_v50 }
 0x1a9   : > { %4646 = vmatmul.mubr.msk.bf16.gmra.mrb[8].mxu0 %vm484_vm3, %v6807_v13 }
 0x1aa   : > { %2762 = vmatprep.mubr.bf16.mxu0 %v7527_v57 }
 0x1ad   : > { %4924 = vmatmul.mubr.msk.bf16.gmra.mrb[40].mxu1 %vm484_vm3, %v7536_v48  ;;  %v3742_v48 = vld [vmem:[%s7501_s2 + $0x40] sm:$0xff] }
 0x1ae   : > { %4927 = vmatprep.mubr.msk.bf16.mxu1 %vm484_vm3, %v7537_v2  ;;  %v3042_v2 = vsel %vm3039_vm8, %v6421_v29, %v6868_v34  ;;  %v3744_v29 = vld [vmem:[%s7501_s2 + $0x50] sm:$0xff] }
 0x1b1   : > { %4647 = vmatmul.mubr.msk.bf16.gmra.mrb[12].mxu0 %vm484_vm3, %v6822_v6 }
 0x1b2   : > { %2772 = vmatprep.mubr.bf16.mxu0 %v7527_v57 }
 0x1b5   : > { %4928 = vmatmul.mubr.msk.bf16.gmra.mrb[44].mxu1 %vm484_vm3, %v7538_v45 }
 0x1b6   : > { %4937 = vmatprep.mubr.msk.bf16.mxu1 %vm484_vm3, %v6461_v53  ;;  %v7542_v53 = vld [vmem:[#allocation11_spill] sm:$0xff] }
 0x1b7   : > { %v2272_v22 = vsel %vm2263_vm6, %v7543_v51, %v7542_v53  ;;  %v3746_v53 = vld [vmem:[%s7501_s2 + $0x60] sm:$0xff]  ;;  %v3747_v51 = vld [vmem:[%s7501_s2 + $0x68] sm:$0xff] }
 0x1b8   : > { %v2310_v27 = vsel %vm509_vm2, %v2272_v22, 0 }
 0x1b9   : > { %4648 = vmatmul.mubr.msk.bf16.gmra.mrb[16].mxu0 %vm484_vm3, %v6834_v14 }
 0x1ba   : > { %2782 = vmatprep.mubr.bf16.mxu0 %v7527_v57 }
 0x1bd   : > { %4938 = vmatmul.mubr.msk.bf16.vlgmr.msra.gmra.mrb[32].mxu1 %vm484_vm3, %v7539_v63 }
 0x1be   : > { %4954 = vmatpush3.bf16.msra.mxu1 %v2266_v50  ;;  %4941 = vmatprep.mubr.msk.bf16.mxu1 %vm484_vm3, %v6523_v20  ;;  %v6866_v20 = vld [vmem:[%s7500_s1 + $0x1b0] sm:$0xff]   ;;  %v2698_v50 = vsel %vm509_vm2, %v7547_v32, 0 }
 0x1bf   : > { %4955 = vmatprep.subr.bf16.mxu1 %v2269_v21 }
 0x1c1   : > { %4649 = vmatmul.mubr.msk.bf16.gmra.mrb[20].mxu0 %vm484_vm3, %v6846_v1 }
 0x1c2   : > { %4956 = vmatpush3.bf16.msra.mxu1 %v2269_v21  ;;  %2792 = vmatprep.mubr.bf16.mxu0 %v7527_v57  ;;  %v7007_v21 = vld [vmem:[%s7500_s1 + $0x1d8] sm:$0xff]  }
 0x1c3   : > { %5436 = vmatprep.subr.msk.bf16.mxu1 %vm509_vm2, %v2272_v22 }
 0x1c5   : > { %4942 = vmatmul.mubr.msk.bf16.gmra.mrb[36].mxu1 %vm484_vm3, %v6548_v46  ;;  %v3414_v46 = vpop.permute.xlu1 %3413 }
 0x1c6   : > { %4958 = vmatpush3.bf16.msra.mxu1 %v2310_v27  ;;  %4945 = vmatprep.mubr.msk.bf16.mxu1 %vm484_vm3, %v6561_v55  ;;  %v6885_v55 = vpop.permute.xlu0 %3415  ;;  %v3748_v27 = vld [vmem:[%s7501_s2 + $0x70] sm:$0xff] }
 0x1c7   : > { %4975 = vmatprep.subr.bf16.mxu1 %v7544_v40  ;;  %v3432_v54 = vsel %vm3427_vm9, %v3414_v46, %v6885_v55 }
 0x1c9   : > { %4650 = vmatmul.mubr.msk.bf16.gmra.mrb[24].mxu0 %vm484_vm3, %v6866_v20  ;;  %v6889_v56 = vpop.permute.xlu1 %3029 }
 0x1ca   : > { %2802 = vmatprep.mubr.bf16.mxu0 %v7527_v57  ;;  %v3412_v9 = vpop.permute.xlu0 %3411  ;;  %v3045_v7 = vsel %vm3039_vm8, %v6454_v30, %v6889_v56 }
 0x1cb   : > { %v3431_v19 = vsel %vm3427_vm9, %v3412_v9, %v3414_v46 }
 0x1cd   : > { %4946 = vmatmul.mubr.msk.bf16.gmra.mrb[40].mxu1 %vm484_vm3, %v7545_v41  ;;  %v3420_v43 = vpop.permute.xlu1 %3419 }
 0x1ce   : > { %4949 = vmatprep.mubr.msk.bf16.mxu1 %vm484_vm3, %v6587_v11  ;;  %v3734_v11 = vld [vmem:[%s7501_s2] sm:$0xff]  ;;  %v3422_v49 = vpop.permute.xlu0 %3421 }
 0x1cf   : > { %3752 = vperm.xlu0 %5475, %v3734_v11   ;;  %v3434_v52 = vsel %vm3427_vm9, %v3420_v43, %v3422_v49 }
 0x1d0   : > { %v3468_v12 = vsel %vm509_vm2, %v3434_v52, 0 }
 0x1d1   : > { %4651 = vmatmul.mubr.msk.bf16.gmra.mrb[28].mxu0 %vm484_vm3, %v6881_v35  ;;  %v6921_v42 = vpop.permute.xlu1 %3423 }
 0x1d2   : > { %3120 = vmatprep.mubr.bf16.mxu0 %v7527_v57  ;;  %v3435_v28 = vsel %vm3427_vm9, %v3422_v49, %v6921_v42  ;;  %v3038_v9 = vpop.permute.xlu0 %3037  ;;  %v5557_v49 = vld [vmem:[%s7500_s1 + $0x200] sm:$0xff]  }
 0x1d5   : > { %4950 = vmatmul.mubr.msk.bf16.gmra.mrb[44].mxu1 %vm484_vm3, %v6599_v3  ;;  %v3428_v3 = vsel %vm3427_vm9, %v3404_v18, %v6786_v5  ;;  %v7039_v18 = vld [vmem:[%s7500_s1 + $0x1e0] sm:$0xff]  }
 0x1d6   : > { %4959 = vmatprep.mubr.msk.bf16.mxu1 %vm484_vm3, %v6615_v24  ;;  %v3737_v24 = vld [vmem:[%s7501_s2 + $0x18] sm:$0xff] }
 0x1d7   : > { %3767 = vperm.xlu0 %5475, %v3737_v24  }
 0x1d9   : > { %4685 = vmatmul.mubr.msk.bf16.vlgmr.msra.gmra.mrb[0].mxu0 %vm484_vm3, %v6897_v47 }
 0x1da   : > { %3130 = vmatprep.mubr.bf16.mxu0 %v7527_v57  ;;  %3477 = vmatpush1.bf16.msra.mxu0 %v3428_v3  ;;  %v3410_v3 = vpop.permute.xlu1 %3409 }
 0x1db   : > { %3478 = vmatprep.subr.bf16.mxu0 %v3432_v54 }
 0x1dd   : > { %4960 = vmatmul.mubr.msk.bf16.vlgmr.msra.gmra.mrb[32].mxu1 %vm484_vm3, %v6644_v37  ;;  %v3739_v37 = vld [vmem:[%s7501_s2 + $0x28] sm:$0xff] }
 0x1de   : > { %4976 = vmatpush3.bf16.msra.mxu1 %v7544_v40  ;;  %4963 = vmatprep.mubr.msk.bf16.mxu1 %vm484_vm3, %v6659_v4  ;;  %v3740_v4 = vld [vmem:[%s7501_s2 + $0x30] sm:$0xff] }
 0x1df   : > { %4977 = vmatprep.subr.bf16.mxu1 %v7546_v0  ;;  %3479 = vmatpush1.bf16.msra.mxu0 %v3431_v19 }
 0x1e0   : > { %v6944_v38 = vpop.f32.mrb[0].mxu1  ;;  %4725 = vmatprep.subr.msk.bf16.mxu0 %vm509_vm2, %v3435_v28  ;;  %3777 = vperm.xlu0 %5475, %v3739_v37   ;;  %v5561_v28 = vld [vmem:[%s7500_s1 + $0x220] sm:$0xff]  }
 0x1e1   : > { %v6947_v10 = vpop.f32.mrb[1].mxu1  ;;  %4686 = vmatmul.mubr.msk.bf16.gmra.mrb[4].mxu0 %vm484_vm3, %v6929_v61  ;;  %3782 = vperm.xlu1 %5476, %v3740_v4  }
 0x1e2   : > { %4978 = vmatpush3.bf16.msra.mxu1 %v7546_v0  ;;  %v6955_v5 = vpop.f32.mrb[2].mxu1  ;;  %3140 = vmatprep.mubr.bf16.mxu0 %v7527_v57 }
 0x1e3   : > { %5437 = vmatprep.subr.msk.bf16.mxu1 %vm509_vm2, %v7547_v32  ;;  %v6963_v59 = vpop.f32.mrb[3].mxu1  ;;  %3481 = vmatpush1.bf16.msra.mxu0 %v3468_v12 }
 0x1e4   : > { %3787 = vperm.xlu0 %5475, %v3741_v15   ;;  %v5563_v15 = vld [vmem:[%s7500_s1 + $0x230] sm:$0xff]  }
 0x1e5   : > { %4964 = vmatmul.mubr.msk.bf16.gmra.mrb[36].mxu1 %vm484_vm3, %v6672_v8  ;;  %v3743_v8 = vld [vmem:[%s7501_s2 + $0x48] sm:$0xff]  ;;  %3792 = vperm.xlu1 %5476, %v3742_v48  }
 0x1e6   : > { %4980 = vmatpush3.bf16.msra.mxu1 %v2698_v50  ;;  %4967 = vmatprep.mubr.msk.bf16.mxu1 %vm484_vm3, %v6693_v33  ;;  %v3745_v33 = vld [vmem:[%s7501_s2 + $0x58] sm:$0xff] }
 0x1e7   : > { %4997 = vmatprep.subr.bf16.mxu1 %v3042_v2 }
 0x1e8   : > { %v6985_v45 = vpop.f32.mrb[4].mxu1  ;;  %3797 = vperm.xlu0 %5475, %v3743_v8  }
 0x1e9   : > { %v6987_v63 = vpop.f32.mrb[5].mxu1  ;;  %4687 = vmatmul.mubr.msk.bf16.gmra.mrb[8].mxu0 %vm484_vm3, %v6972_v26  ;;  %3802 = vperm.xlu1 %5476, %v3744_v29  }
 0x1ea   : > { %v6994_v62 = vpop.f32.mrb[6].mxu1  ;;  %3150 = vmatprep.mubr.bf16.mxu0 %v7527_v57 }
 0x1eb   : > { %v7000_v31 = vpop.f32.mrb[7].mxu1 }
 0x1ec   : > { %3807 = vperm.xlu0 %5475, %v3745_v33  }
 0x1ed   : > { %4968 = vmatmul.mubr.msk.bf16.gmra.mrb[40].mxu1 %vm484_vm3, %v6708_v39  ;;  %3812 = vperm.xlu1 %5476, %v3746_v53  }
 0x1ee   : > { %4971 = vmatprep.mubr.msk.bf16.mxu1 %vm484_vm3, %v6728_v58  ;;  %v3749_v58 = vld [vmem:[%s7501_s2 + $0x78] sm:$0xff] }
 0x1f0   : > { %v7017_v22 = vpop.f32.mrb[8].mxu1  ;;  %3817 = vperm.xlu0 %5475, %v3747_v51  }
 0x1f1   : > { %v7019_v39 = vpop.f32.mrb[9].mxu1  ;;  %4688 = vmatmul.mubr.msk.bf16.gmra.mrb[12].mxu0 %vm484_vm3, %v7007_v21  ;;  %3822 = vperm.xlu1 %5476, %v3748_v27  }
 0x1f2   : > { %v7026_v34 = vpop.f32.mrb[10].mxu1  ;;  %3160 = vmatprep.mubr.bf16.mxu0 %v7527_v57 }
 0x1f3   : > { %v7032_v40 = vpop.f32.mrb[11].mxu1 }
 0x1f4   : > { %3827 = vperm.xlu0 %5475, %v3749_v58  }
 0x1f5   : > { %4972 = vmatmul.mubr.msk.bf16.gmra.mrb[44].mxu1 %vm484_vm3, %v6743_v16 }
 0x1f6   : > { %4981 = vmatprep.mubr.msk.bf16.mxu1 %vm484_vm3, %v6753_v23  ;;  %v5554_v23 = vld [vmem:[%s7500_s1 + $0x1e8] sm:$0xff]  }
 0x1f8   : > { %v7043_v46 = vpop.f32.mrb[12].mxu1 }
 0x1f9   : > { %v7045_v41 = vpop.f32.mrb[13].mxu1  ;;  %4689 = vmatmul.mubr.msk.bf16.gmra.mrb[16].mxu0 %vm484_vm3, %v7039_v18 }
 0x1fa   : > { %v7049_v11 = vpop.f32.mrb[14].mxu1  ;;  %3170 = vmatprep.mubr.bf16.mxu0 %v7527_v57 }
 0x1fb   : > { %v7052_v16 = vpop.f32.mrb[15].mxu1 }
 0x1fd   : > { %4982 = vmatmul.mubr.msk.bf16.vlgmr.msra.gmra.mrb[32].mxu1 %vm484_vm3, %v6780_v44  ;;  %v3048_v44 = vsel %vm3039_vm8, %v6516_v17, %v3038_v9  ;;  %v5555_v17 = vld [vmem:[%s7500_s1 + $0x1f0] sm:$0xff]  }
 0x1fe   : > { %4998 = vmatpush3.bf16.msra.mxu1 %v3042_v2  ;;  %4985 = vmatprep.mubr.msk.bf16.mxu1 %vm484_vm3, %v6807_v13  ;;  %v3430_v13 = vsel %vm3427_vm9, %v6788_v60, %v3410_v3  ;;  %v3086_v56 = vsel %vm509_vm2, %v3048_v44, 0  ;;  %v5564_v2 = vld [vmem:[%s7500_s1 + $0x238] sm:$0xff]  }
 0x1ff   : > { %4999 = vmatprep.subr.bf16.mxu1 %v3045_v7 }
 0x200   : > { %v7064_v43 = vpop.f32.mrb[16].mxu1 }
 0x201   : > { %v7066_v54 = vpop.f32.mrb[17].mxu1  ;;  %4690 = vmatmul.mubr.msk.bf16.gmra.mrb[20].mxu0 %vm484_vm3, %v5554_v23 }
 0x202   : > { %5000 = vmatpush3.bf16.msra.mxu1 %v3045_v7  ;;  %v7071_v25 = vpop.f32.mrb[18].mxu1  ;;  %3180 = vmatprep.mubr.bf16.mxu0 %v7527_v57 }
 0x203   : > { %5438 = vmatprep.subr.msk.bf16.mxu1 %vm509_vm2, %v3048_v44  ;;  %v7075_v30 = vpop.f32.mrb[19].mxu1 }
 0x205   : > { %4986 = vmatmul.mubr.msk.bf16.gmra.mrb[36].mxu1 %vm484_vm3, %v6822_v6 }
 0x206   : > { %5002 = vmatpush3.bf16.msra.mxu1 %v3086_v56  ;;  %4989 = vmatprep.mubr.msk.bf16.mxu1 %vm484_vm3, %v6834_v14  ;;  %v5556_v14 = vld [vmem:[%s7500_s1 + $0x1f8] sm:$0xff]  }
 0x207   : > { %5019 = vmatprep.subr.bf16.mxu1 %v3430_v13 }
 0x208   : > { %v7087_v24 = vpop.f32.mrb[20].mxu1 }
 0x209   : > { %v7089_v19 = vpop.f32.mrb[21].mxu1  ;;  %4691 = vmatmul.mubr.msk.bf16.gmra.mrb[24].mxu0 %vm484_vm3, %v5555_v17 }
 0x20a   : > { %v7092_v60 = vpop.f32.mrb[22].mxu1  ;;  %3190 = vmatprep.mubr.bf16.mxu0 %v7527_v57 }
 0x20b   : > { %v7095_v6 = vpop.f32.mrb[23].mxu1 }
 0x20d   : > { %4990 = vmatmul.mubr.msk.bf16.gmra.mrb[40].mxu1 %vm484_vm3, %v6846_v1  ;;  %v3418_v1 = vpop.permute.xlu0 %3417 }
 0x20e   : > { %4993 = vmatprep.mubr.msk.bf16.mxu1 %vm484_vm3, %v6866_v20  ;;  %v5558_v20 = vld [vmem:[%s7500_s1 + $0x208] sm:$0xff]  }
 0x211   : > { %4692 = vmatmul.mubr.msk.bf16.gmra.mrb[28].mxu0 %vm484_vm3, %v5556_v14 }
 0x212   : > { %3508 = vmatprep.mubr.bf16.mxu0 %v7527_v57 }
 0x215   : > { %4994 = vmatmul.mubr.msk.bf16.gmra.mrb[44].mxu1 %vm484_vm3, %v6881_v35  ;;  %v3433_v35 = vsel %vm3427_vm9, %v6885_v55, %v3418_v1  ;;  %v5559_v55 = vld [vmem:[%s7500_s1 + $0x210] sm:$0xff]  }
 0x216   : > { %5003 = vmatprep.mubr.msk.bf16.mxu1 %vm484_vm3, %v6897_v47  ;;  %v3426_v47 = vpop.permute.xlu1 %3425 }
 0x217   : > { %v3436_v52 = vsel %vm3427_vm9, %v6921_v42, %v3426_v47  ;;  %v5560_v42 = vld [vmem:[%s7500_s1 + $0x218] sm:$0xff]  }
 0x219   : > { %4726 = vmatmul.mubr.msk.bf16.vlgmr.msra.gmra.mrb[0].mxu0 %vm484_vm3, %v5557_v49 }
 0x21a   : > { %3518 = vmatprep.mubr.bf16.mxu0 %v7527_v57  ;;  %v7194_v51 = vpop.permute.xlu1 %3757 }
 0x21d   : > { %5004 = vmatmul.mubr.msk.bf16.vlgmr.msra.gmra.mrb[32].mxu1 %vm484_vm3, %v6929_v61  ;;  %v3474_v61 = vsel %vm509_vm2, %v3436_v52, 0 }
 0x21e   : > { %5020 = vmatpush3.bf16.msra.mxu1 %v3430_v13  ;;  %5007 = vmatprep.mubr.msk.bf16.mxu1 %vm484_vm3, %v6972_v26 }
 0x21f   : > { %5021 = vmatprep.subr.bf16.mxu1 %v3433_v35 }
 0x221   : > { %4727 = vmatmul.mubr.msk.bf16.gmra.mrb[4].mxu0 %vm484_vm3, %v5558_v20 }
 0x222   : > { %5022 = vmatpush3.bf16.msra.mxu1 %v3433_v35  ;;  %3528 = vmatprep.mubr.bf16.mxu0 %v7527_v57 }
 0x223   : > { %5439 = vmatprep.subr.msk.bf16.mxu1 %vm509_vm2, %v3436_v52 }
 0x225   : > { %5008 = vmatmul.mubr.msk.bf16.gmra.mrb[36].mxu1 %vm484_vm3, %v7007_v21 }
 0x226   : > { %5024 = vmatpush3.bf16.msra.mxu1 %v3474_v61  ;;  %5011 = vmatprep.mubr.msk.bf16.mxu1 %vm484_vm3, %v7039_v18 }
 0x229   : > { %4728 = vmatmul.mubr.msk.bf16.gmra.mrb[8].mxu0 %vm484_vm3, %v5559_v55 }
 0x22a   : > { %3538 = vmatprep.mubr.bf16.mxu0 %v7527_v57 }
 0x22d   : > { %5012 = vmatmul.mubr.msk.bf16.gmra.mrb[40].mxu1 %vm484_vm3, %v5554_v23 }
 0x22e   : > { %5015 = vmatprep.mubr.msk.bf16.mxu1 %vm484_vm3, %v5555_v17 }
 0x231   : > { %4729 = vmatmul.mubr.msk.bf16.gmra.mrb[12].mxu0 %vm484_vm3, %v5560_v42 }
 0x232   : > { %3548 = vmatprep.mubr.bf16.mxu0 %v7527_v57 }
 0x235   : > { %5016 = vmatmul.mubr.msk.bf16.gmra.mrb[44].mxu1 %vm484_vm3, %v5556_v14 }
 0x236   : > { %5025 = vmatprep.mubr.msk.bf16.mxu1 %vm484_vm3, %v5557_v49  ;;  %v7202_v49 = vpop.permute.xlu1 %3762 }
 0x239   : > { %4730 = vmatmul.mubr.msk.bf16.gmra.mrb[16].mxu0 %vm484_vm3, %v5561_v28 }
 0x23a   : > { %3558 = vmatprep.mubr.bf16.mxu0 %v7527_v57 }
 0x23d   : > { %5026 = vmatmul.mubr.msk.bf16.vlgmr.msra.gmra.mrb[32].mxu1 %vm484_vm3, %v5558_v20 }
 0x23e   : > { %5029 = vmatprep.mubr.msk.bf16.mxu1 %vm484_vm3, %v5559_v55 }
 0x240   : > { %v7158_v37 = vpop.f32.mrb[24].mxu1 }
 0x241   : > { %v7160_v0 = vpop.f32.mrb[25].mxu1  ;;  %4731 = vmatmul.mubr.msk.bf16.gmra.mrb[20].mxu0 %vm484_vm3, %v5562_v36 }
 0x242   : > { %v7163_v12 = vpop.f32.mrb[26].mxu1  ;;  %3568 = vmatprep.mubr.bf16.mxu0 %v7527_v57 }
 0x243   : > { %v7166_v4 = vpop.f32.mrb[27].mxu1 }
 0x245   : > { %5030 = vmatmul.mubr.msk.bf16.gmra.mrb[36].mxu1 %vm484_vm3, %v5560_v42 }
 0x246   : > { %5033 = vmatprep.mubr.msk.bf16.mxu1 %vm484_vm3, %v5561_v28 }
 0x248   : > { %v7173_v32 = vpop.f32.mrb[28].mxu1 }
 0x249   : > { %v7175_v50 = vpop.f32.mrb[29].mxu1  ;;  %4732 = vmatmul.mubr.msk.bf16.gmra.mrb[24].mxu0 %vm484_vm3, %v5563_v15 }
 0x24a   : > { %v7178_v26 = vpop.f32.mrb[30].mxu1  ;;  %3578 = vmatprep.mubr.bf16.mxu0 %v7527_v57 }
 0x24b   : > { %v7181_v48 = vpop.f32.mrb[31].mxu1 }
 0x24d   : > { %5034 = vmatmul.mubr.msk.bf16.gmra.mrb[40].mxu1 %vm484_vm3, %v5562_v36 }
 0x24e   : > { %5037 = vmatprep.mubr.msk.bf16.mxu1 %vm484_vm3, %v5563_v15  ;;  %v7190_v29 = vpop.permute.xlu0 %3752 }
 0x251   : > { %4733 = vmatmul.mubr.msk.bf16.gmra.mrb[28].mxu0 %vm484_vm3, %v5564_v2 }
 0x255   : > { %5038 = vmatmul.mubr.msk.bf16.gmra.mrb[44].mxu1 %vm484_vm3, %v5564_v2 }
 0x256   : > { %v7206_v47 = vpop.permute.xlu0 %3767 }
 0x2ec   : > { %v3510_v8 = vpop.f32.mrb[0].mxu0 }
 0x2ed   : > { %v5047_v33 = vadd.f32 %v3510_v8, %v6944_v38  ;;  %v3512_v57 = vpop.f32.mrb[1].mxu0 }
 0x2ee   : > { %v5048_v21 = vadd.f32 %v3512_v57, %v6947_v10  ;;  %v3514_v53 = vpop.f32.mrb[2].mxu0 }
 0x2ef   : > { %v5049_v27 = vadd.f32 %v3514_v53, %v6955_v5  ;;  %v3830_v58 = vadd.f32 %v5047_v33, %v7190_v29  ;;  %v3516_v18 = vpop.f32.mrb[3].mxu0 }
 0x2f0   : > { %v3831_v23 = vadd.f32 %v5048_v21, %v7190_v29  ;;  %v5050_v7 = vadd.f32 %v3516_v18, %v6963_v59  ;;  %v7216_v18 = vpop.permute.xlu1 %3772 }
 0x2f1   : > { %v3878_v9 = vsub.f32 0.0, %v3830_v58  ;;  %v3833_v3 = vadd.f32 %v5049_v27, %v7194_v51 }
 0x2f2   : > { %v3879_v44 = vsub.f32 0.0, %v3831_v23  ;;  %v3834_v38 = vadd.f32 %v5050_v7, %v7194_v51 }
 0x2f3   : > { %v3890_v13 = vmul.f32 1.442695, %v3878_v9  ;;  %v3881_v10 = vsub.f32 0.0, %v3833_v3 }
 0x2f4   : > { %v3892_v56 = vmul.f32 1.442695, %v3879_v44  ;;  %v3882_v17 = vsub.f32 0.0, %v3834_v38  ;;  %v3520_v14 = vpop.f32.mrb[4].mxu0 }
 0x2f5   : > { %v5051_v5 = vadd.f32 %v3520_v14, %v6985_v45  ;;  %v3522_v1 = vpop.f32.mrb[5].mxu0  ;;  %5565 = vpow2.f32 %v3890_v13  ;;  %v3896_v20 = vmul.f32 1.442695, %v3881_v10 }
 0x2f6   : > { %v5052_v59 = vadd.f32 %v3522_v1, %v6987_v63  ;;  %v3524_v35 = vpop.f32.mrb[6].mxu0  ;;  %5567 = vpow2.f32 %v3892_v56  ;;  %v3898_v52 = vmul.f32 1.442695, %v3882_v17 }
 0x2f7   : > { %v3836_v61 = vadd.f32 %v5051_v5, %v7202_v49  ;;  %v5053_v55 = vadd.f32 %v3524_v35, %v6994_v62  ;;  %v3526_v42 = vpop.f32.mrb[7].mxu0  ;;  %5569 = vpow2.f32 %v3896_v20 }
 0x2f8   : > { %v3837_v28 = vadd.f32 %v5052_v59, %v7202_v49  ;;  %v5054_v36 = vadd.f32 %v3526_v42, %v7000_v31  ;;  %5571 = vpow2.f32 %v3898_v52 }
 0x2f9   : > { %v3884_v45 = vsub.f32 0.0, %v3836_v61  ;;  %v3839_v15 = vadd.f32 %v5053_v55, %v7206_v47 }
 0x2fa   : > { %v3885_v2 = vsub.f32 0.0, %v3837_v28  ;;  %v3840_v63 = vadd.f32 %v5054_v36, %v7206_v47 }
 0x2fb   : > { %v3902_v8 = vmul.f32 1.442695, %v3884_v45  ;;  %v3887_v33 = vsub.f32 0.0, %v3839_v15  ;;  %v7228_v15 = vpop.permute.xlu1 %3782 }
 0x2fc   : > { %v3904_v57 = vmul.f32 1.442695, %v3885_v2  ;;  %v3888_v21 = vsub.f32 0.0, %v3840_v63  ;;  %v3530_v53 = vpop.f32.mrb[8].mxu0 }
 0x2fd   : > { %5573 = vpow2.f32 %v3902_v8  ;;  %v5055_v62 = vadd.f32 %v3530_v53, %v7017_v22  ;;  %v3532_v27 = vpop.f32.mrb[9].mxu0  ;;  %v3908_v58 = vmul.f32 1.442695, %v3887_v33  ;;  %v7222_v22 = vpop.permute.xlu0 %3777 }
 0x2fe   : > { %v5056_v31 = vadd.f32 %v3532_v27, %v7019_v39  ;;  %v3534_v23 = vpop.f32.mrb[10].mxu0  ;;  %v3910_v7 = vmul.f32 1.442695, %v3888_v21  ;;  %5575 = vpow2.f32 %v3904_v57 }
 0x2ff   : > { %v3842_v9 = vadd.f32 %v5055_v62, %v7216_v18  ;;  %v5057_v3 = vadd.f32 %v3534_v23, %v7026_v34  ;;  %v3536_v44 = vpop.f32.mrb[11].mxu0  ;;  %v5566_v38 = vpop.eup %5565  ;;  %5577 = vpow2.f32 %v3908_v58 }
 0x300   : > { %v3843_v13 = vadd.f32 %v5056_v31, %v7216_v18  ;;  %v5058_v10 = vadd.f32 %v3536_v44, %v7032_v40  ;;  %v5568_v56 = vpop.eup %5567  ;;  %v3914_v1 = vadd.f32 1.0, %v5566_v38  ;;  %5579 = vpow2.f32 %v3910_v7 }
 0x301   : > { %v3950_v17 = vsub.f32 0.0, %v3842_v9  ;;  %v3845_v39 = vadd.f32 %v5057_v3, %v7222_v22  ;;  %v5570_v59 = vpop.eup %5569  ;;  %v3915_v35 = vadd.f32 1.0, %v5568_v56  ;;  %v7234_v27 = vpop.permute.xlu0 %3787 }
 0x302   : > { %v3951_v14 = vsub.f32 0.0, %v3843_v13  ;;  %v3846_v5 = vadd.f32 %v5058_v10, %v7222_v22  ;;  %v5572_v61 = vpop.eup %5571  ;;  %v3917_v8 = vadd.f32 1.0, %v5570_v59 }
 0x303   : > { %v3962_v34 = vmul.f32 1.442695, %v3950_v17  ;;  %v3953_v20 = vsub.f32 0.0, %v3845_v39  ;;  %v3918_v53 = vadd.f32 1.0, %v5572_v61 }
 0x304   : > { %v3540_v52 = vpop.f32.mrb[12].mxu0  ;;  %v3964_v55 = vmul.f32 1.442695, %v3951_v14  ;;  %v3954_v40 = vsub.f32 0.0, %v3846_v5 }
 0x305   : > { %v5059_v42 = vadd.f32 %v3540_v52, %v7043_v46  ;;  %v3542_v28 = vpop.f32.mrb[13].mxu0  ;;  %5581 = vpow2.f32 %v3962_v34  ;;  %v3968_v36 = vmul.f32 1.442695, %v3953_v20  ;;  %v7240_v34 = vpop.permute.xlu1 %3792 }
 0x306   : > { %v5060_v45 = vadd.f32 %v3542_v28, %v7045_v41  ;;  %v3544_v2 = vpop.f32.mrb[14].mxu0  ;;  %5583 = vrcp.f32 %v3914_v1  ;;  %v3970_v41 = vmul.f32 1.442695, %v3954_v40 }
 0x307   : > { %v5574_v63 = vpop.eup %5573  ;;  %v3848_v33 = vadd.f32 %v5059_v42, %v7228_v15  ;;  %v5061_v57 = vadd.f32 %v3544_v2, %v7049_v11  ;;  %v3546_v21 = vpop.f32.mrb[15].mxu0  ;;  %5585 = vrcp.f32 %v3915_v35 }
 0x308   : > { %v3849_v46 = vadd.f32 %v5060_v45, %v7228_v15  ;;  %v5062_v62 = vadd.f32 %v3546_v21, %v7052_v16  ;;  %5587 = vpow2.f32 %v3964_v55  ;;  %v5576_v23 = vpop.eup %5575  ;;  %v3920_v7 = vadd.f32 1.0, %v5574_v63  ;;  %v7249_v63 = vpop.permute.xlu0 %3797 }
 0x309   : > { %v3956_v58 = vsub.f32 0.0, %v3848_v33  ;;  %v3851_v31 = vadd.f32 %v5061_v57, %v7234_v27  ;;  %5589 = vpow2.f32 %v3968_v36  ;;  %v5578_v38 = vpop.eup %5577  ;;  %v3921_v56 = vadd.f32 1.0, %v5576_v23 }
 0x30a   : > { %v3957_v9 = vsub.f32 0.0, %v3849_v46  ;;  %v3852_v11 = vadd.f32 %v5062_v62, %v7234_v27  ;;  %5591 = vrcp.f32 %v3917_v8  ;;  %v5580_v10 = vpop.eup %5579  ;;  %v3923_v59 = vadd.f32 1.0, %v5578_v38 }
 0x30b   : > { %v3974_v3 = vmul.f32 1.442695, %v3956_v58  ;;  %v3959_v44 = vsub.f32 0.0, %v3851_v31  ;;  %5593 = vrcp.f32 %v3918_v53  ;;  %v3924_v40 = vadd.f32 1.0, %v5580_v10 }
 0x30c   : > { %v3976_v13 = vmul.f32 1.442695, %v3957_v9  ;;  %v3550_v16 = vpop.f32.mrb[16].mxu0  ;;  %5595 = vpow2.f32 %v3970_v41  ;;  %v3960_v17 = vsub.f32 0.0, %v3852_v11 }
 0x30d   : > { %v5063_v39 = vadd.f32 %v3550_v16, %v7064_v43  ;;  %v3552_v14 = vpop.f32.mrb[17].mxu0  ;;  %5597 = vrcp.f32 %v3920_v7  ;;  %v3980_v5 = vmul.f32 1.442695, %v3959_v44 }
 0x30e   : > { %v5064_v1 = vadd.f32 %v3552_v14, %v7066_v54  ;;  %v3554_v20 = vpop.f32.mrb[18].mxu0  ;;  %5599 = vpow2.f32 %v3974_v3  ;;  %v3982_v54 = vmul.f32 1.442695, %v3960_v17 }
 0x30f   : > { %v3854_v35 = vadd.f32 %v5063_v39, %v7240_v34  ;;  %v5065_v52 = vadd.f32 %v3554_v20, %v7071_v25  ;;  %v3556_v61 = vpop.f32.mrb[19].mxu0  ;;  %v5582_v55 = vpop.eup %5581  ;;  %5601 = vpow2.f32 %v3976_v13 }
 0x310   : > { %v3855_v43 = vadd.f32 %v5064_v1, %v7240_v34  ;;  %v5066_v42 = vadd.f32 %v3556_v61, %v7075_v30  ;;  %v5027_v28 = vpop.f32.mrb[32].mxu1  ;;  %v7246_v36 = vpop.eup %5583  ;;  %5603 = vrcp.f32 %v3921_v56  ;;  %v3986_v33 = vadd.f32 1.0, %v5582_v55 }
 0x311   : > { %v4022_v45 = vsub.f32 0.0, %v3854_v35  ;;  %v3838_v2 = vadd.f32 %v5027_v28, %v7202_v49  ;;  %v3623_v8 = vpop.f32.mrb[33].mxu1  ;;  %v7251_v25 = vpop.eup %5585  ;;  %5605 = vpow2.f32 %v3980_v5  ;;  %v3857_v21 = vadd.f32 %v5065_v52, %v7249_v63 }
 0x312   : > { %v4023_v57 = vsub.f32 0.0, %v3855_v43  ;;  %v5028_v53 = vpop.f32.mrb[34].mxu1  ;;  %v5588_v30 = vpop.eup %5587  ;;  %5607 = vrcp.f32 %v3923_v59  ;;  %v3858_v41 = vadd.f32 %v5066_v42, %v7249_v63  ;;  %v3832_v13 = vadd.f32 %v7190_v29, %v3623_v8 }
 0x313   : > { %v4034_v46 = vmul.f32 1.442695, %v4022_v45  ;;  %v3886_v62 = vsub.f32 0.0, %v3838_v2  ;;  %v3626_v58 = vpop.f32.mrb[35].mxu1  ;;  %v5590_v31 = vpop.eup %5589  ;;  %5609 = vrcp.f32 %v3924_v40  ;;  %v4025_v11 = vsub.f32 0.0, %v3857_v21 }
 0x314   : > { %v4036_v49 = vmul.f32 1.442695, %v4023_v57  ;;  %v3560_v23 = vpop.f32.mrb[20].mxu0  ;;  %v7255_v7 = vpop.eup %5591  ;;  %5611 = vpow2.f32 %v3982_v54  ;;  %v3987_v38 = vadd.f32 1.0, %v5588_v30  ;;  %v3989_v56 = vadd.f32 1.0, %v5590_v31 }
 0x315   : > { %v3906_v9 = vmul.f32 1.442695, %v3886_v62  ;;  %v3562_v3 = vpop.f32.mrb[21].mxu0  ;;  %v7257_v44 = vpop.eup %5593  ;;  %5613 = vrcp.f32 %v3986_v33  ;;  %v4026_v17 = vsub.f32 0.0, %v3858_v41  ;;  %v5067_v39 = vadd.f32 %v3560_v23, %v7087_v24 }
 0x316   : > { %v3564_v16 = vpop.f32.mrb[22].mxu0  ;;  %v5596_v10 = vpop.eup %5595  ;;  %5615 = vpow2.f32 %v4034_v46  ;;  %v3841_v1 = vadd.f32 %v5028_v53, %v7206_v47  ;;  %v5068_v20 = vadd.f32 %v3562_v3, %v7089_v19  ;;  %v4040_v52 = vmul.f32 1.442695, %v4025_v11 }
 0x317   : > { %v3566_v14 = vpop.f32.mrb[23].mxu0  ;;  %v7261_v5 = vpop.eup %5597  ;;  %5617 = vpow2.f32 %v4036_v49  ;;  %v3835_v29 = vadd.f32 %v7194_v51, %v3626_v58  ;;  %v3990_v24 = vadd.f32 1.0, %v5596_v10  ;;  %v3880_v43 = vsub.f32 0.0, %v3832_v13 }
 0x318   : > { %v5031_v59 = vpop.f32.mrb[36].mxu1  ;;  %v5600_v35 = vpop.eup %5599  ;;  %5619 = vpow2.f32 %v3906_v9  ;;  %v4042_v19 = vmul.f32 1.442695, %v4026_v17  ;;  %v3889_v8 = vsub.f32 0.0, %v3841_v1  ;;  %v5069_v51 = vadd.f32 %v3564_v16, %v7092_v60 }
 0x319   : > { %v7266_v61 = vpop.permute.xlu1 %3802  ;;  %v3639_v55 = vpop.f32.mrb[37].mxu1  ;;  %5621 = vrcp.f32 %v3987_v38  ;;  %v3992_v2 = vadd.f32 1.0, %v5600_v35  ;;  %v5070_v33 = vadd.f32 %v3566_v14, %v7095_v6  ;;  %v3883_v30 = vsub.f32 0.0, %v3835_v29 }
 0x31a   : > { %v5602_v40 = vpop.eup %5601  ;;  %v3860_v42 = vadd.f32 %v5067_v39, %v7266_v61  ;;  %v5032_v28 = vpop.f32.mrb[38].mxu1  ;;  %5623 = vrcp.f32 %v3989_v56  ;;  %v3894_v41 = vmul.f32 1.442695, %v3880_v43  ;;  %v3861_v60 = vadd.f32 %v5068_v20, %v7266_v61 }
 0x31b   : > { %v7269_v54 = vpop.eup %5603  ;;  %v7271_v47 = vpop.f32.mrb[39].mxu1  ;;  %v3993_v53 = vadd.f32 1.0, %v5602_v40  ;;  %5625 = vpow2.f32 %v4040_v52  ;;  %v3912_v11 = vmul.f32 1.442695, %v3889_v8  ;;  %v3850_v3 = vadd.f32 %v5031_v59, %v7228_v15 }
 0x31c   : > { %v5606_v45 = vpop.eup %5605  ;;  %v3570_v57 = vpop.f32.mrb[24].mxu0  ;;  %5627 = vrcp.f32 %v3990_v24  ;;  %v4028_v58 = vsub.f32 0.0, %v3860_v42  ;;  %v3900_v10 = vmul.f32 1.442695, %v3883_v30  ;;  %v4029_v15 = vsub.f32 0.0, %v3861_v60 }
 0x31d   : > { %v7275_v21 = vpop.eup %5607  ;;  %v3572_v46 = vpop.f32.mrb[25].mxu0  ;;  %v3995_v23 = vadd.f32 1.0, %v5606_v45  ;;  %5629 = vpow2.f32 %v4042_v19  ;;  %v3844_v52 = vadd.f32 %v7216_v18, %v3639_v55  ;;  %v3958_v43 = vsub.f32 0.0, %v3850_v3 }
 0x31e   : > { %v7277_v62 = vpop.eup %5609  ;;  %v3574_v31 = vpop.f32.mrb[26].mxu0  ;;  %5631 = vrcp.f32 %v3992_v2  ;;  %v4046_v1 = vmul.f32 1.442695, %v4028_v58  ;;  %v5071_v42 = vadd.f32 %v3570_v57, %v7158_v37  ;;  %v3853_v55 = vadd.f32 %v5032_v28, %v7234_v27 }
 0x31f   : > { %v5612_v49 = vpop.eup %5611  ;;  %v3576_v9 = vpop.f32.mrb[27].mxu0  ;;  %5633 = vrcp.f32 %v3993_v53  ;;  %v7306_v37 = vadd.f32 %v3574_v31, %v7163_v12  ;;  %v3952_v28 = vsub.f32 0.0, %v3844_v52 }
 0x320   : > { %v7280_v6 = vpop.eup %5613  ;;  %v7283_v38 = vpop.permute.xlu0 %3807  ;;  %v3996_v14 = vadd.f32 1.0, %v5612_v49  ;;  %5635 = vpow2.f32 %v3894_v41  ;;  %v4048_v41 = vmul.f32 1.442695, %v4029_v15  ;;  %v3961_v31 = vsub.f32 0.0, %v3853_v55 }
 0x321   : > { %v7285_v13 = vpop.f32.mrb[40].mxu1  ;;  %v5616_v16 = vpop.eup %5615  ;;  %v3863_v56 = vadd.f32 %v5069_v51, %v7283_v38  ;;  %5637 = vrcp.f32 %v3995_v23  ;;  %v3864_v59 = vadd.f32 %v5070_v33, %v7283_v38  ;;  %v7302_v51 = vadd.f32 %v3572_v46, %v7160_v0 }
 0x322   : > { %v7288_v17 = vpop.f32.mrb[41].mxu1  ;;  %v5618_v39 = vpop.eup %5617  ;;  %v4058_v24 = vadd.f32 1.0, %v5616_v16  ;;  %5639 = vpow2.f32 %v3912_v11  ;;  %v3978_v23 = vmul.f32 1.442695, %v3958_v43  ;;  %v5074_v0 = vadd.f32 %v3576_v9, %v7166_v4 }
 0x323   : > { %v7290_v20 = vpop.f32.mrb[42].mxu1  ;;  %v5620_v35 = vpop.eup %5619  ;;  %v4059_v2 = vadd.f32 1.0, %v5618_v39  ;;  %5641 = vpow2.f32 %v3900_v10  ;;  %v4031_v8 = vsub.f32 0.0, %v3863_v56  ;;  %v4032_v58 = vsub.f32 0.0, %v3864_v59 }
 0x324   : > { %v7294_v29 = vpop.f32.mrb[43].mxu1  ;;  %v7296_v40 = vpop.eup %5621  ;;  %v3922_v18 = vadd.f32 1.0, %v5620_v35  ;;  %5643 = vpow2.f32 %v4046_v1  ;;  %v3966_v35 = vmul.f32 1.442695, %v3952_v28  ;;  %v3984_v59 = vmul.f32 1.442695, %v3961_v31 }
 0x325   : > { %v3580_v19 = vpop.f32.mrb[28].mxu0  ;;  %v7299_v45 = vpop.eup %5623  ;;  %5645 = vrcp.f32 %v3996_v14  ;;  %v4052_v27 = vmul.f32 1.442695, %v4031_v8  ;;  %v4054_v56 = vmul.f32 1.442695, %v4032_v58  ;;  %v3847_v14 = vadd.f32 %v7222_v22, %v7271_v47 }
 0x326   : > { %v3582_v33 = vpop.f32.mrb[29].mxu0  ;;  %v5626_v30 = vpop.eup %5625  ;;  %5647 = vrcp.f32 %v4058_v24  ;;  %v7328_v52 = vadd.f32 %v3580_v19, %v7173_v32 }
 0x327   : > { %v3584_v53 = vpop.f32.mrb[30].mxu0  ;;  %v7308_v49 = vpop.eup %5627  ;;  %5649 = vrcp.f32 %v4059_v2  ;;  %v4061_v12 = vadd.f32 1.0, %v5626_v30  ;;  %v7333_v8 = vadd.f32 %v3582_v33, %v7175_v50  ;;  %v3955_v22 = vsub.f32 0.0, %v3847_v14 }
 0x328   : > { %v3586_v57 = vpop.f32.mrb[31].mxu0  ;;  %v7311_v46 = vpop.f32.mrb[44].mxu1  ;;  %5651 = vrcp.f32 %v3922_v18  ;;  %v7337_v55 = vadd.f32 %v3584_v53, %v7178_v26  ;;  %v3862_v26 = vadd.f32 %v7285_v13, %v7266_v61 }
 0x329   : > { %v5630_v60 = vpop.eup %5629  ;;  %v7313_v11 = vpop.f32.mrb[45].mxu1  ;;  %5653 = vpow2.f32 %v4048_v41  ;;  %v7342_v19 = vadd.f32 %v3586_v57, %v7181_v48  ;;  %v3972_v53 = vmul.f32 1.442695, %v3955_v22 }
 0x32a   : > { %v7315_v3 = vpop.eup %5631  ;;  %v7317_v16 = vpop.f32.mrb[46].mxu1  ;;  %v4062_v39 = vadd.f32 1.0, %v5630_v60  ;;  %5655 = vpow2.f32 %v3978_v23  ;;  %v3856_v23 = vadd.f32 %v7240_v34, %v7288_v17  ;;  %v4030_v34 = vsub.f32 0.0, %v3862_v26 }
 0x32b   : > { %v7319_v10 = vpop.eup %5633  ;;  %v7321_v4 = vpop.f32.mrb[47].mxu1  ;;  %5657 = vpow2.f32 %v4052_v27 }
 0x32c   : > { %v5636_v9 = vpop.eup %5635  ;;  %5659 = vrcp.f32 %v4061_v12  ;;  %v7330_v2 = vpop.permute.xlu1 %3812  ;;  %v4024_v31 = vsub.f32 0.0, %v3856_v23 }
 0x32d   : > { %v7325_v1 = vpop.eup %5637  ;;  %v3916_v43 = vadd.f32 1.0, %v5636_v9  ;;  %5661 = vpow2.f32 %v4054_v56  ;;  %v3866_v47 = vadd.f32 %v5071_v42, %v7330_v2  ;;  %v7357_v57 = vpop.permute.xlu0 %3817  ;;  %v3867_v60 = vadd.f32 %v7302_v51, %v7330_v2 }
 0x32e   : > { %v5640_v15 = vpop.eup %5639  ;;  %5663 = vrcp.f32 %v4062_v39  ;;  %v3869_v61 = vadd.f32 %v7306_v37, %v7357_v57  ;;  %v3870_v28 = vadd.f32 %v5074_v0, %v7357_v57  ;;  %v4050_v39 = vmul.f32 1.442695, %v4030_v34 }
 0x32f   : > { %v5642_v24 = vpop.eup %5641  ;;  %v3925_v32 = vadd.f32 1.0, %v5640_v15  ;;  %5665 = vpow2.f32 %v3966_v35  ;;  %v4106_v35 = vld [vmem:[%s7372_s23] sm:$0xff]  ;;  %v4038_v15 = vmul.f32 1.442695, %v4024_v31 }
 0x330   : > { %v5644_v18 = vpop.eup %5643  ;;  %v3919_v50 = vadd.f32 1.0, %v5642_v24  ;;  %5667 = vpow2.f32 %v3984_v59 }
 0x331   : > { %v7339_v30 = vpop.eup %5645  ;;  %5669 = vrcp.f32 %v3916_v43  ;;  %v4064_v58 = vadd.f32 1.0, %v5644_v18 }
 0x332   : > { %v7344_v41 = vpop.eup %5647  ;;  %5671 = vtanh.f32 %v3866_v47  ;;  %v4118_v47 = vmul.f32 %v7280_v6, %v4106_v35  ;;  %v3859_v6 = vadd.f32 %v7249_v63, %v7294_v29 }
 0x333   : > { %v7346_v33 = vpop.eup %5649  ;;  %5673 = vrcp.f32 %v3925_v32 }
 0x334   : > { %v7350_v42 = vpop.eup %5651  ;;  %5675 = vrcp.f32 %v3919_v50  ;;  %v3823_v50 = vpop.permute.xlu1 %3822  ;;  %v4027_v31 = vsub.f32 0.0, %v3859_v6 }
 0x335   : > { %v5654_v48 = vpop.eup %5653  ;;  %5677 = vrcp.f32 %v4064_v58  ;;  %v3865_v58 = vadd.f32 %v7290_v20, %v7283_v38  ;;  %v4107_v38 = vld [vmem:[%s7372_s23 + $0x8] sm:$0xff]  ;;  %v3828_v20 = vpop.permute.xlu0 %3827 }
 0x336   : > { %v5656_v27 = vpop.eup %5655  ;;  %v4065_v12 = vadd.f32 1.0, %v5654_v48  ;;  %5679 = vpow2.f32 %v3972_v53  ;;  %v3873_v48 = vadd.f32 %v7333_v8, %v3823_v50  ;;  %v3876_v29 = vadd.f32 %v7342_v19, %v3828_v20 }
 0x337   : > { %v5658_v13 = vpop.eup %5657  ;;  %v3994_v9 = vadd.f32 1.0, %v5656_v27  ;;  %5681 = vtanh.f32 %v3867_v60  ;;  %v4109_v27 = vld [vmem:[%s7372_s23 + $0x18] sm:$0xff]  ;;  %v4033_v63 = vsub.f32 0.0, %v3865_v58  ;;  %v4119_v34 = vmul.f32 %v7296_v40, %v4107_v38 }
 0x338   : > { %v7364_v17 = vpop.eup %5659  ;;  %v4067_v37 = vadd.f32 1.0, %v5658_v13  ;;  %5683 = vtanh.f32 %v3869_v61  ;;  %v3875_v61 = vadd.f32 %v7337_v55, %v3828_v20  ;;  %v3868_v58 = vadd.f32 %v7330_v2, %v7313_v11 }
 0x339   : > { %v7366_v56 = vpop.eup %5661  ;;  %5685 = vtanh.f32 %v3870_v28  ;;  %v4110_v28 = vld [vmem:[%s7372_s23 + $0x20] sm:$0xff]  ;;  %v3871_v38 = vadd.f32 %v7357_v57, %v7321_v4 }
 0x33a   : > { %v7374_v51 = vpop.eup %5663  ;;  %5687 = vrcp.f32 %v4065_v12  ;;  %v4122_v19 = vmul.f32 %v7308_v49, %v4110_v28 }
 0x33b   : > { %v5666_v0 = vpop.eup %5665  ;;  %5689 = vrcp.f32 %v3994_v9  ;;  %v4121_v9 = vmul.f32 %v7299_v45, %v4109_v27  ;;  %v4044_v45 = vmul.f32 1.442695, %v4027_v31 }
 0x33c   : > { %v5668_v14 = vpop.eup %5667  ;;  %v3988_v24 = vadd.f32 1.0, %v5666_v0  ;;  %5691 = vrcp.f32 %v4067_v37 }
 0x33d   : > { %v7377_v59 = vpop.eup %5669  ;;  %v3997_v18 = vadd.f32 1.0, %v5668_v14  ;;  %5693 = vpow2.f32 %v4050_v39  ;;  %v4056_v14 = vmul.f32 1.442695, %v4033_v63 }
 0x33e   : > { %v5672_v43 = vpop.eup %5671  ;;  %5695 = vpow2.f32 %v4038_v15 }
 0x33f   : > { %v7379_v22 = vpop.eup %5673  ;;  %v4130_v32 = vmul.f32 %v5672_v43, %v7246_v36  ;;  %v3872_v36 = vadd.f32 %v7328_v52, %v3823_v50  ;;  %5697 = vrcp.f32 %v3988_v24 }
 0x340   : > { %v7385_v26 = vpop.eup %5675  ;;  %5699 = vrcp.f32 %v3997_v18  ;;  %v4068_v18 = vadd.f32 1.0, %v7366_v56  ;;  %v3877_v56 = vadd.f32 %v7317_v16, %v3828_v20 }
 0x341   : > { %v7396_v53 = vpop.eup %5677  ;;  %v4142_v23 = vadd.f32 %v4130_v32, %v4118_v47  ;;  %v4112_v32 = vld [vmem:[%s7372_s23 + $0x30] sm:$0xff] }
 0x342   : > { %v5680_v60 = vpop.eup %5679  ;;  %v4124_v2 = vmul.f32 %v7315_v3, %v4112_v32 }
 0x343   : > { %v5682_v13 = vpop.eup %5681  ;;  %5701 = vtanh.f32 %v4142_v23  ;;  %4178 = vst [vmem:[%s7391_s26] sm:$0xff] %v4142_v23  ;;  %v3991_v24 = vadd.f32 1.0, %v5680_v60  ;;  %v4115_v23 = vld [vmem:[%s7372_s23 + $0x48] sm:$0xff]  ;;  %v4116_v60 = vld [vmem:[%s7372_s23 + $0x50] sm:$0xff] }
 0x344   : > { %v5684_v52 = vpop.eup %5683  ;;  %v4131_v12 = vmul.f32 %v5682_v13, %v7251_v25  ;;  %5703 = vtanh.f32 %v3872_v36  ;;  %v4127_v4 = vmul.f32 %v7325_v1, %v4115_v23  ;;  %v4128_v13 = vmul.f32 %v7339_v30, %v4116_v60 }
 0x345   : > { %v5686_v8 = vpop.eup %5685  ;;  %v4133_v55 = vmul.f32 %v5684_v52, %v7255_v7  ;;  %5705 = vtanh.f32 %v3873_v48 }
 0x346   : > { %v7409_v37 = vpop.eup %5687  ;;  %v4143_v0 = vadd.f32 %v4131_v12, %v4119_v34  ;;  %v4134_v39 = vmul.f32 %v5686_v8, %v7257_v44  ;;  %5707 = vtanh.f32 %v3875_v61  ;;  %v3874_v44 = vadd.f32 %v7311_v46, %v3823_v50  ;;  %v4113_v50 = vld [vmem:[%s7372_s23 + $0x38] sm:$0xff] }
 0x347   : > { %v7413_v40 = vpop.eup %5689  ;;  %v4145_v25 = vadd.f32 %v4133_v55, %v4121_v9  ;;  %5709 = vtanh.f32 %v3876_v29  ;;  %v4125_v61 = vmul.f32 %v7319_v10, %v4113_v50  ;;  %v4117_v9 = vld [vmem:[%s7372_s23 + $0x58] sm:$0xff] }
 0x348   : > { %v7415_v35 = vpop.eup %5691  ;;  %5711 = vtanh.f32 %v4143_v0  ;;  %4179 = vst [vmem:[%s7391_s26 + $0x8] sm:$0xff] %v4143_v0  ;;  %v4146_v7 = vadd.f32 %v4134_v39, %v4122_v19 }
 0x349   : > { %v5694_v15 = vpop.eup %5693  ;;  %5713 = vtanh.f32 %v4145_v25  ;;  %4181 = vst [vmem:[%s7391_s26 + $0x18] sm:$0xff] %v4145_v25 }
 0x34a   : > { %v7420_v49 = vpop.eup %5695  ;;  %5715 = vtanh.f32 %v4146_v7  ;;  %4182 = vst [vmem:[%s7391_s26 + $0x20] sm:$0xff] %v4146_v7  ;;  %v4066_v34 = vadd.f32 1.0, %v5694_v15 }
 0x34b   : > { %v7423_v43 = vpop.eup %5697  ;;  %5717 = vpow2.f32 %v4056_v14  ;;  %v4060_v8 = vadd.f32 1.0, %v7420_v49 }
 0x34c   : > { %v7426_v47 = vpop.eup %5699  ;;  %5719 = vpow2.f32 %v4044_v45 }
 0x34d   : > { %v5702_v46 = vpop.eup %5701  ;;  %5721 = vtanh.f32 %v3874_v44 }
 0x34e   : > { %v5704_v6 = vpop.eup %5703  ;;  %5723 = vrcp.f32 %v3991_v24  ;;  %v4166_v36 = vmul.f32 %v5702_v46, %v7344_v41 }
 0x34f   : > { %v5706_v11 = vpop.eup %5705  ;;  %5725 = vrcp.f32 %v4068_v18  ;;  %v4136_v48 = vmul.f32 %v5704_v6, %v7261_v5 }
 0x350   : > { %v5708_v27 = vpop.eup %5707  ;;  %4190 = vst [vmem:[%s7435_s29] sm:$0xff] %v4166_v36  ;;  %v4137_v16 = vmul.f32 %v5706_v11, %v7269_v54  ;;  %5727 = vtanh.f32 %v3868_v58 }
 0x351   : > { %v5710_v41 = vpop.eup %5709  ;;  %v4148_v20 = vadd.f32 %v4136_v48, %v4124_v2  ;;  %v4139_v57 = vmul.f32 %v5708_v27, %v7275_v21  ;;  %5729 = vtanh.f32 %v3877_v56  ;;  %v4114_v21 = vld [vmem:[%s7372_s23 + $0x40] sm:$0xff] }
 0x352   : > { %v5712_v3 = vpop.eup %5711  ;;  %v4149_v5 = vadd.f32 %v4137_v16, %v4125_v61  ;;  %v4140_v10 = vmul.f32 %v5710_v41, %v7277_v62  ;;  %5731 = vtanh.f32 %v3871_v38  ;;  %v4126_v12 = vmul.f32 %v7413_v40, %v4114_v21 }
 0x353   : > { %v5714_v54 = vpop.eup %5713  ;;  %v4167_v28 = vmul.f32 %v5712_v3, %v7346_v33  ;;  %5733 = vtanh.f32 %v4148_v20  ;;  %4184 = vst [vmem:[%s7391_s26 + $0x30] sm:$0xff] %v4148_v20  ;;  %v4151_v1 = vadd.f32 %v4139_v57, %v4127_v4  ;;  %v4129_v40 = vmul.f32 %v7426_v47, %v4117_v9 }
 0x354   : > { %v5716_v63 = vpop.eup %5715  ;;  %v4169_v29 = vmul.f32 %v5714_v54, %v7364_v17  ;;  %5735 = vtanh.f32 %v4149_v5  ;;  %4185 = vst [vmem:[%s7391_s26 + $0x38] sm:$0xff] %v4149_v5  ;;  %v4152_v30 = vadd.f32 %v4140_v10, %v4128_v13  ;;  %v4108_v17 = vld [vmem:[%s7372_s23 + $0x10] sm:$0xff] }
 0x355   : > { %v5718_v62 = vpop.eup %5717  ;;  %4191 = vst [vmem:[%s7435_s29 + $0x8] sm:$0xff] %v4167_v28  ;;  %v4170_v52 = vmul.f32 %v5716_v63, %v7374_v51  ;;  %5737 = vtanh.f32 %v4151_v1  ;;  %4187 = vst [vmem:[%s7391_s26 + $0x48] sm:$0xff] %v4151_v1  ;;  %v4111_v51 = vld [vmem:[%s7372_s23 + $0x28] sm:$0xff]  ;;  %v4120_v25 = vmul.f32 %v7423_v43, %v4108_v17 }
 0x356   : > { %v5720_v33 = vpop.eup %5719  ;;  %4193 = vst [vmem:[%s7435_s29 + $0x18] sm:$0xff] %v4169_v29  ;;  %5739 = vtanh.f32 %v4152_v30  ;;  %4188 = vst [vmem:[%s7391_s26 + $0x50] sm:$0xff] %v4152_v30  ;;  %v4069_v39 = vadd.f32 1.0, %v5718_v62 }
 0x357   : > { %v5722_v31 = vpop.eup %5721  ;;  %4194 = vst [vmem:[%s7435_s29 + $0x20] sm:$0xff] %v4170_v52  ;;  %5741 = vrcp.f32 %v4066_v34  ;;  %v4063_v7 = vadd.f32 1.0, %v5720_v33 }
 0x358   : > { %v5724_v55 = vpop.eup %5723  ;;  %v4138_v0 = vmul.f32 %v5722_v31, %v7350_v42  ;;  %5743 = vrcp.f32 %v4060_v8 }
 0x359   : > { %v5726_v19 = vpop.eup %5725  ;;  %v4123_v49 = vmul.f32 %v5724_v55, %v4111_v51 }
 0x35a   : > { %v5728_v14 = vpop.eup %5727  ;;  %v4150_v45 = vadd.f32 %v4138_v0, %v4126_v12 }
 0x35b   : > { %v5730_v15 = vpop.eup %5729  ;;  %v4132_v44 = vmul.f32 %v5728_v14, %v7377_v59 }
 0x35c   : > { %v5732_v24 = vpop.eup %5731  ;;  %5745 = vtanh.f32 %v4150_v45  ;;  %4186 = vst [vmem:[%s7391_s26 + $0x40] sm:$0xff] %v4150_v45  ;;  %v4141_v42 = vmul.f32 %v5730_v15, %v7379_v22 }
 0x35d   : > { %v5734_v18 = vpop.eup %5733  ;;  %5747 = vrcp.f32 %v4069_v39  ;;  %v4144_v43 = vadd.f32 %v4132_v44, %v4120_v25  ;;  %v4135_v32 = vmul.f32 %v5732_v24, %v7385_v26 }
 0x35e   : > { %v5736_v47 = vpop.eup %5735  ;;  %5749 = vrcp.f32 %v4063_v7  ;;  %v4172_v59 = vmul.f32 %v5734_v18, %v7396_v53  ;;  %v4153_v58 = vadd.f32 %v4141_v42, %v4129_v40 }
 0x35f   : > { %v5738_v46 = vpop.eup %5737  ;;  %v4173_v50 = vmul.f32 %v5736_v47, %v7409_v37  ;;  %5751 = vtanh.f32 %v4144_v43  ;;  %4180 = vst [vmem:[%s7391_s26 + $0x10] sm:$0xff] %v4144_v43  ;;  %v4147_v22 = vadd.f32 %v4135_v32, %v4123_v49 }
 0x360   : > { %v5740_v56 = vpop.eup %5739  ;;  %4196 = vst [vmem:[%s7435_s29 + $0x30] sm:$0xff] %v4172_v59  ;;  %v4175_v6 = vmul.f32 %v5738_v46, %v7415_v35  ;;  %5753 = vtanh.f32 %v4153_v58  ;;  %4189 = vst [vmem:[%s7391_s26 + $0x58] sm:$0xff] %v4153_v58 }
 0x361   : > { %4197 = vst [vmem:[%s7435_s29 + $0x38] sm:$0xff] %v4173_v50  ;;  %v4176_v26 = vmul.f32 %v5740_v56, %v5726_v19  ;;  %5755 = vtanh.f32 %v4147_v22  ;;  %4183 = vst [vmem:[%s7391_s26 + $0x28] sm:$0xff] %v4147_v22  ;;  %v5742_v53 = vpop.eup %5741 }
 0x362   : > { %4199 = vst [vmem:[%s7435_s29 + $0x48] sm:$0xff] %v4175_v6  ;;  %v5744_v37 = vpop.eup %5743 }
 0x363   : > { %4200 = vst [vmem:[%s7435_s29 + $0x50] sm:$0xff] %v4176_v26 }
 0x366   : > { %v5746_v36 = vpop.eup %5745 }
 0x367   : > { %v5748_v23 = vpop.eup %5747  ;;  %v4174_v38 = vmul.f32 %v5746_v36, %v5742_v53 }
 0x368   : > { %v5750_v11 = vpop.eup %5749 }
 0x369   : > { %v5752_v2 = vpop.eup %5751  ;;  %4198 = vst [vmem:[%s7435_s29 + $0x40] sm:$0xff] %v4174_v38 }
 0x36a   : > { %v5754_v35 = vpop.eup %5753  ;;  %v4168_v48 = vmul.f32 %v5752_v2, %v5744_v37 }
 0x36b   : > { %v5756_v60 = vpop.eup %5755  ;;  %v4177_v27 = vmul.f32 %v5754_v35, %v5748_v23 }
 0x36c   : > { %4192 = vst [vmem:[%s7435_s29 + $0x10] sm:$0xff] %v4168_v48  ;;  %v4171_v61 = vmul.f32 %v5756_v60, %v5750_v11 }
 0x36d   : > { %4201 = vst [vmem:[%s7435_s29 + $0x58] sm:$0xff] %v4177_v27 }
 0x36e   : > { %4195 = vst [vmem:[%s7435_s29 + $0x28] sm:$0xff] %v4171_v61 }
 0x36f PF: > { %s16_s20 = sadd.s32 1, %s5779_s20   ;;  %s7548_s18 = smov %s5775_s19 }
 0x370   : > { %p13_p5 = scmp.ge.s32.totalorder %s16_s20, 4   ;;  %s7549_s19 = smov %s7551_s21 }
 0x372   :  { %15 = sbr.rel (!%p13_p5) target bundleno = 2 (0x2), region = 89 }

</bundles_post_ra>
